<compile_context>
chip_gen: v7x
topology: tpu7x:2x2x1
jax: 0.10.0
libtpu: 0.0.40
codegen_flags: <defaults>
</compile_context>

<pallas_src>
import functools

import jax
import jax.numpy as jnp
from jax import lax
from jax.experimental import pallas as pl
from jax.experimental.pallas import tpu as pltpu


# ================================ kernel =====================================

def _pam_kernel(x_ref, xq_ref, xres_ref, w_ref, b_ref, gamma_ref, o_ref, *, c8):
    """Fused PAM forward for one (batch, query-tile) grid step.

    x_ref    : (1, C, HW)      full input, channel-major (for K and V)
    xq_ref   : (1, C, TQ)      query-tile columns of the same input (for Q)
    xres_ref : (1, TQ, C)      raw-reinterpreted residual strip (torch `.view`)
    w_ref    : (2*c8 + C, C)   stacked [Wq; Wk; Wv] 1x1-conv weights, bf16
    b_ref    : (2*c8 + C, 1)   stacked [bq; bk; bv] biases, f32
    gamma_ref: (1,) f32 scalar in SMEM
    o_ref    : (1, TQ, C)      gamma * (att @ V^T) + x   (raw NCHW-flat order)
    """
    x = x_ref[0].astype(jnp.bfloat16)          # (C, HW)  MXU operand
    xq = xq_ref[0].astype(jnp.bfloat16)        # (C, TQ)
    w = w_ref[...]                             # (2*c8+C, C) bf16
    bias = b_ref[...]                          # (2*c8+C, 1) f32

    # ---- K / V projection over all spatial positions: one stacked MXU pass ---
    # (Recomputed per query tile so both grid axes stay "parallel"; cheap vs the
    #  attention matmuls.  Row offset c8 is a multiple of 16 for C % 128 == 0.)
    kv = jnp.dot(w[c8:, :], x, preferred_element_type=jnp.float32) + bias[c8:, :]
    k = kv[:c8, :].astype(jnp.bfloat16)        # (c8, HW)
    v = kv[c8:, :].astype(jnp.bfloat16)        # (C,  HW)

    # ---- Q projection for this query tile only --------------------------------
    q = jnp.dot(w[:c8, :], xq, preferred_element_type=jnp.float32) + bias[:c8, :]
    q = q.astype(jnp.bfloat16)                 # (c8, TQ)

    # ---- energy[i, j] = sum_c q[c, i] * k[c, j]; stable softmax over j (f32) --
    energy = lax.dot_general(q, k, (((0,), (0,)), ((), ())),
                             preferred_element_type=jnp.float32)        # (TQ, HW)
    m = jnp.max(energy, axis=-1, keepdims=True)
    e = jnp.exp(energy - m)                                             # f32
    s = jnp.sum(e, axis=-1, keepdims=True)                              # (TQ, 1)

    # ---- deferred normalization: (e @ V^T) scaled by gamma / rowsum -----------
    out = lax.dot_general(e.astype(jnp.bfloat16), v, (((1,), (1,)), ((), ())),
                          preferred_element_type=jnp.float32)           # (TQ, C)
    # approx reciprocal (~2^-12 rel err) runs on the EUP; use approx=False for
    # tighter torch parity if ever required.
    scale = gamma_ref[0] * pl.reciprocal(s, approx=True)                # (TQ, 1)

    # ---- fused residual against the raw NCHW-flat reinterpretation of x -------
    o_ref[0] = scale * out + xres_ref[0]


# ================================ wrapper ====================================

def pam_forward(x, wq, bq, wk, bk, wv, bv, gamma, *, tq=None):
    """PAM_Module.forward.  x: (B, C, H, W) float32 -> (B, C, H, W) float32."""
    b, c, h, w = x.shape
    hw = h * w
    c8 = c // 8
    assert c % 8 == 0 and c8 >= 1, "in_dim must be a multiple of 8 (in_dim // 8 heads)"
    nqkv = 2 * c8 + c

    # Query tile: multiple of 128 (lane-dense x_q block & MXU-friendly rows),
    # dividing HW; fall back to the full spatial extent otherwise.
    if tq is None:
        for cand in (512, 256, 128):
            if hw % cand == 0:
                tq = cand
                break
        else:
            tq = hw
    assert hw % tq == 0 and (tq % 128 == 0 or tq == hw)
    n_q = hw // tq

    x = x.astype(jnp.float32)
    x_chw = x.reshape(b, c, hw)   # true channel-major layout (free reshape)
    x_res = x.reshape(b, hw, c)   # raw reinterpretation (free reshape) for residual

    w_qkv = jnp.concatenate([wq, wk, wv], axis=0).astype(jnp.bfloat16)           # (nqkv, c)
    b_qkv = jnp.concatenate([bq, bk, bv], axis=0).astype(jnp.float32).reshape(nqkv, 1)
    gamma = jnp.asarray(gamma, jnp.float32).reshape(1)

    kern = functools.partial(_pam_kernel, c8=c8)
    out = pl.pallas_call(
        kern,
        out_shape=jax.ShapeDtypeStruct((b, hw, c), jnp.float32),
        grid=(b, n_q),
        in_specs=[
            # Full channel-major x (K/V); block index constant across the query
            # axis so it is fetched once per batch element.
            pl.BlockSpec((1, c, hw), lambda bi, qi: (bi, 0, 0)),
            # Query-tile columns of the same array (Q projection).
            pl.BlockSpec((1, c, tq), lambda bi, qi: (bi, 0, qi)),
            # Residual strip in raw (HW, C) reinterpretation — only the tile.
            pl.BlockSpec((1, tq, c), lambda bi, qi: (bi, qi, 0)),
            # Stacked bf16 weights / f32 biases (shared across the grid).
            pl.BlockSpec((nqkv, c), lambda bi, qi: (0, 0)),
            pl.BlockSpec((nqkv, 1), lambda bi, qi: (0, 0)),
            # gamma scalar lives in SMEM.
            pl.BlockSpec(memory_space=pltpu.MemorySpace.SMEM),
        ],
        out_specs=pl.BlockSpec((1, tq, c), lambda bi, qi: (bi, qi, 0)),
        compiler_params=pltpu.CompilerParams(
            # batch and query-tile both independent -> megacore split on v7x
            # even when B == 1; on v5e/v6e this is just a short loop.
            dimension_semantics=("parallel", "parallel"),
            vmem_limit_bytes=32 * 1024 * 1024,
        ),
    )(x_chw, x_chw, x_res, w_qkv, b_qkv, gamma)

    # Row-major reshape == torch's `.view(B, C, H, W)` of the contiguous
    # (B, HW, C) result; the residual was already added inside the kernel.
    return out.reshape(b, c, h, w)


# =========================== pure-JAX reference ==============================

def pam_reference(x, wq, bq, wk, bk, wv, bv, gamma):
    b, c, h, w = x.shape
    hw = h * w
    xf = x.reshape(b, c, hw)
    q = jnp.einsum("oc,bcp->bop", wq, xf) + bq[None, :, None]     # (b, c//8, hw)
    k = jnp.einsum("oc,bcp->bop", wk, xf) + bk[None, :, None]
    v = jnp.einsum("oc,bcp->bop", wv, xf) + bv[None, :, None]     # (b, c, hw)
    energy = jnp.einsum("bci,bcj->bij", q, k)                     # (b, hw, hw)
    att = jax.nn.softmax(energy, axis=-1)
    out = jnp.einsum("bij,bcj->bic", att, v)                      # (b, hw, c)
    out = out.reshape(b, c, h, w)                                 # torch raw .view
    return gamma * out + x


# ================================= main ======================================

if __name__ == "__main__":
    B, C, H, W = 2, 128, 16, 16
    C8 = C // 8

    key = jax.random.PRNGKey(0)
    kx, kq, kk, kv, kbq, kbk, kbv = jax.random.split(key, 7)
    x = jax.random.normal(kx, (B, C, H, W), jnp.float32)
    wq = 0.05 * jax.random.normal(kq, (C8, C), jnp.float32)
    wk = 0.05 * jax.random.normal(kk, (C8, C), jnp.float32)
    wv = 0.05 * jax.random.normal(kv, (C, C), jnp.float32)
    bq = 0.05 * jax.random.normal(kbq, (C8,), jnp.float32)
    bk = 0.05 * jax.random.normal(kbk, (C8,), jnp.float32)
    bv = 0.05 * jax.random.normal(kbv, (C,), jnp.float32)

    # tq=128 -> 2 query tiles at HW=256: exercises the tiled grid path.
    fwd = jax.jit(functools.partial(pam_forward, tq=128))

    # gamma = 0: faithful to nn.Parameter(torch.zeros(1)) init -> output == x.
    out0 = jax.block_until_ready(fwd(x, wq, bq, wk, bk, wv, bv, jnp.float32(0.0)))
    assert out0.shape == (B, C, H, W)
    assert bool(jnp.allclose(out0, x, rtol=1e-5, atol=1e-5))

    # Nonzero gamma exercises the attention path; check against the pure-f32
    # JAX reference of the exact PyTorch computation.  bf16 MXU operands keep
    # the error at the ~1e-3 level at these scales.
    gamma = jnp.float32(0.5)
    out = jax.block_until_ready(fwd(x, wq, bq, wk, bk, wv, bv, gamma))
    ref = pam_reference(x, wq, bq, wk, bk, wv, bv, gamma)
    assert bool(jnp.all(jnp.isfinite(out)))
    err = float(jnp.max(jnp.abs(out - ref)))
    assert bool(jnp.allclose(out, ref, rtol=1e-2, atol=1e-2)), err

    print("KERNEL_OK")
</pallas_src>

<mosaic_0001>
module attributes {stable_mosaic.version = 11 : i64} {
  func.func @_pam_kernel(%arg0: i32, %arg1: i32, %arg2: memref<1x128x256xf32, #tpu.memory_space<vmem>>, %arg3: memref<1x128x128xf32, #tpu.memory_space<vmem>>, %arg4: memref<1x128x128xf32, #tpu.memory_space<vmem>>, %arg5: memref<160x128xbf16, #tpu.memory_space<vmem>>, %arg6: memref<160x1xf32, #tpu.memory_space<vmem>>, %arg7: memref<1xf32, #tpu.memory_space<smem>>, %arg8: memref<1x128x128xf32, #tpu.memory_space<vmem>>) attributes {dimension_semantics = [#tpu.dimension_semantics<parallel>, #tpu.dimension_semantics<parallel>], iteration_bounds = array<i64: 2, 2>, scalar_prefetch = 0 : i64, scratch_operands = 0 : i64, tpu.core_type = #tpu.core_type<tc>, window_params = [{transform_indices = @transform_0, window_bounds = array<i64: 1, 128, 256>}, {transform_indices = @transform_1, window_bounds = array<i64: 1, 128, 128>}, {transform_indices = @transform_2, window_bounds = array<i64: 1, 128, 128>}, {pipeline_mode = #tpu.pipeline_mode<synchronous>, transform_indices = @transform_3, window_bounds = array<i64: 160, 128>}, {pipeline_mode = #tpu.pipeline_mode<synchronous>, transform_indices = @transform_4, window_bounds = array<i64: 160, 1>}, {transform_indices = @transform_5, window_bounds = array<i64: 1>}, {transform_indices = @transform_6, window_bounds = array<i64: 1, 128, 128>}]} {
    %c0 = arith.constant 0 : index
    %c0_0 = arith.constant 0 : index
    %c0_1 = arith.constant 0 : index
    %0 = vector.load %arg2[%c0, %c0_0, %c0_1] : memref<1x128x256xf32, #tpu.memory_space<vmem>>, vector<1x128x256xf32>
    %1 = vector.shape_cast %0 : vector<1x128x256xf32> to vector<128x256xf32>
    %2 = arith.truncf %1 : vector<128x256xf32> to vector<128x256xbf16>
    %c0_2 = arith.constant 0 : index
    %c0_3 = arith.constant 0 : index
    %c0_4 = arith.constant 0 : index
    %3 = vector.load %arg3[%c0_2, %c0_3, %c0_4] : memref<1x128x128xf32, #tpu.memory_space<vmem>>, vector<1x128x128xf32>
    %4 = vector.shape_cast %3 : vector<1x128x128xf32> to vector<128x128xf32>
    %5 = arith.truncf %4 : vector<128x128xf32> to vector<128x128xbf16>
    %c0_5 = arith.constant 0 : index
    %c0_6 = arith.constant 0 : index
    %6 = vector.load %arg5[%c0_5, %c0_6] : memref<160x128xbf16, #tpu.memory_space<vmem>>, vector<160x128xbf16>
    %c0_7 = arith.constant 0 : index
    %c0_8 = arith.constant 0 : index
    %7 = vector.load %arg6[%c0_7, %c0_8] : memref<160x1xf32, #tpu.memory_space<vmem>>, vector<160x1xf32>
    %8 = vector.extract_strided_slice %6 {offsets = [16, 0], sizes = [144, 128], strides = [1, 1]} : vector<160x128xbf16> to vector<144x128xbf16>
    %cst = arith.constant dense<0.000000e+00> : vector<144x256xf32>
    %9 = tpu.matmul %8, %2, %cst {dimension_numbers = #tpu.dot_dimension_numbers<[1], [0], [0], [1], [0, 0, 1, 1], [], []>} : vector<144x128xbf16>, vector<128x256xbf16>, vector<144x256xf32> -> vector<144x256xf32>
    %10 = vector.extract_strided_slice %7 {offsets = [16, 0], sizes = [144, 1], strides = [1, 1]} : vector<160x1xf32> to vector<144x1xf32>
    %11 = vector.broadcast %10 : vector<144x1xf32> to vector<144x256xf32>
    %12 = arith.addf %9, %11 : vector<144x256xf32>
    %13 = vector.extract_strided_slice %12 {offsets = [0, 0], sizes = [16, 256], strides = [1, 1]} : vector<144x256xf32> to vector<16x256xf32>
    %14 = arith.truncf %13 : vector<16x256xf32> to vector<16x256xbf16>
    %15 = vector.extract_strided_slice %12 {offsets = [16, 0], sizes = [128, 256], strides = [1, 1]} : vector<144x256xf32> to vector<128x256xf32>
    %16 = arith.truncf %15 : vector<128x256xf32> to vector<128x256xbf16>
    %17 = vector.extract_strided_slice %6 {offsets = [0, 0], sizes = [16, 128], strides = [1, 1]} : vector<160x128xbf16> to vector<16x128xbf16>
    %cst_9 = arith.constant dense<0.000000e+00> : vector<16x128xf32>
    %18 = tpu.matmul %17, %5, %cst_9 {dimension_numbers = #tpu.dot_dimension_numbers<[1], [0], [0], [1], [0, 0, 1, 1], [], []>} : vector<16x128xbf16>, vector<128x128xbf16>, vector<16x128xf32> -> vector<16x128xf32>
    %19 = vector.extract_strided_slice %7 {offsets = [0, 0], sizes = [16, 1], strides = [1, 1]} : vector<160x1xf32> to vector<16x1xf32>
    %20 = vector.broadcast %19 : vector<16x1xf32> to vector<16x128xf32>
    %21 = arith.addf %18, %20 : vector<16x128xf32>
    %22 = arith.truncf %21 : vector<16x128xf32> to vector<16x128xbf16>
    %cst_10 = arith.constant dense<0.000000e+00> : vector<128x256xf32>
    %23 = tpu.matmul %22, %14, %cst_10 {dimension_numbers = #tpu.dot_dimension_numbers<[0], [0], [1], [1], [0, 1, 1, 1], [], []>} : vector<16x128xbf16>, vector<16x256xbf16>, vector<128x256xf32> -> vector<128x256xf32>
    %cst_11 = arith.constant dense<0xFF800000> : vector<128xf32>
    %24 = vector.multi_reduction <maximumf>, %23, %cst_11 [1] : vector<128x256xf32> to vector<128xf32>
    %25 = vector.shape_cast %24 : vector<128xf32> to vector<128x1xf32>
    %26 = vector.broadcast %25 : vector<128x1xf32> to vector<128x256xf32>
    %27 = arith.subf %23, %26 : vector<128x256xf32>
    %28 = math.exp %27 : vector<128x256xf32>
    %cst_12 = arith.constant dense<0.000000e+00> : vector<128xf32>
    %29 = vector.multi_reduction <add>, %28, %cst_12 [1] : vector<128x256xf32> to vector<128xf32>
    %30 = vector.shape_cast %29 : vector<128xf32> to vector<128x1xf32>
    %31 = arith.truncf %28 : vector<128x256xf32> to vector<128x256xbf16>
    %cst_13 = arith.constant dense<0.000000e+00> : vector<128x128xf32>
    %32 = tpu.matmul %31, %16, %cst_13 {dimension_numbers = #tpu.dot_dimension_numbers<[1], [1], [0], [0], [0, 0, 1, 0], [], []>} : vector<128x256xbf16>, vector<128x256xbf16>, vector<128x128xf32> -> vector<128x128xf32>
    %c0_14 = arith.constant 0 : index
    %33 = memref.load %arg7[%c0_14] : memref<1xf32, #tpu.memory_space<smem>>
    %34 = tpu.reciprocal %30 {approx = true} : vector<128x1xf32> -> vector<128x1xf32>
    %35 = vector.broadcast %33 : f32 to vector<128x1xf32>
    %36 = arith.mulf %35, %34 : vector<128x1xf32>
    %37 = vector.broadcast %36 : vector<128x1xf32> to vector<128x128xf32>
    %38 = arith.mulf %37, %32 : vector<128x128xf32>
    %c0_15 = arith.constant 0 : index
    %c0_16 = arith.constant 0 : index
    %c0_17 = arith.constant 0 : index
    %39 = vector.load %arg4[%c0_15, %c0_16, %c0_17] : memref<1x128x128xf32, #tpu.memory_space<vmem>>, vector<1x128x128xf32>
    %40 = vector.shape_cast %39 : vector<1x128x128xf32> to vector<128x128xf32>
    %41 = arith.addf %38, %40 : vector<128x128xf32>
    %c0_18 = arith.constant 0 : index
    %c0_19 = arith.constant 0 : index
    %c0_20 = arith.constant 0 : index
    %42 = vector.load %arg8[%c0_18, %c0_19, %c0_20] : memref<1x128x128xf32, #tpu.memory_space<vmem>>, vector<1x128x128xf32>
    %43 = vector.shape_cast %42 : vector<1x128x128xf32> to vector<128x128xf32>
    %44 = vector.shape_cast %41 : vector<128x128xf32> to vector<1x128x128xf32>
    tpu.vector_store %arg8[%c0_18, %c0_19, %c0_20], %44 {strides = array<i32>} : memref<1x128x128xf32, #tpu.memory_space<vmem>>, vector<1x128x128xf32>,
    return
  }
  func.func @transform_0(%arg0: i32, %arg1: i32) -> (i32, i32, i32) {
    %c0_i32 = arith.constant 0 : i32
    %c0_i32_0 = arith.constant 0 : i32
    %c0_i32_1 = arith.constant 0 : i32
    return %arg0, %c0_i32, %c0_i32_0 : i32, i32, i32
  }
  func.func @transform_1(%arg0: i32, %arg1: i32) -> (i32, i32, i32) {
    %c0_i32 = arith.constant 0 : i32
    %c0_i32_0 = arith.constant 0 : i32
    return %arg0, %c0_i32, %arg1 : i32, i32, i32
  }
  func.func @transform_2(%arg0: i32, %arg1: i32) -> (i32, i32, i32) {
    %c0_i32 = arith.constant 0 : i32
    %c0_i32_0 = arith.constant 0 : i32
    return %arg0, %arg1, %c0_i32 : i32, i32, i32
  }
  func.func @transform_3(%arg0: i32, %arg1: i32) -> (i32, i32) {
    %c0_i32 = arith.constant 0 : i32
    %c0_i32_0 = arith.constant 0 : i32
    %c0_i32_1 = arith.constant 0 : i32
    return %c0_i32, %c0_i32_0 : i32, i32
  }
  func.func @transform_4(%arg0: i32, %arg1: i32) -> (i32, i32) {
    %c0_i32 = arith.constant 0 : i32
    %c0_i32_0 = arith.constant 0 : i32
    %c0_i32_1 = arith.constant 0 : i32
    return %c0_i32, %c0_i32_0 : i32, i32
  }
  func.func @transform_5(%arg0: i32, %arg1: i32) -> i32 {
    %c0_i32 = arith.constant 0 : i32
    %c0_i32_0 = arith.constant 0 : i32
    return %c0_i32 : i32
  }
  func.func @transform_6(%arg0: i32, %arg1: i32) -> (i32, i32, i32) {
    %c0_i32 = arith.constant 0 : i32
    %c0_i32_0 = arith.constant 0 : i32
    return %arg0, %arg1, %c0_i32 : i32, i32, i32
  }
}

</mosaic_0001>

<bundles_post_ra>
// kernel: pam_forward.1
= control target key start
LH: loop header
LB: loop body
LE: loop exit
PB: predicated region body
PF: predicated region fallthrough
CT: control target
= control target key end

     0   :  { %s2434_s0 = inlined_call_operand.vmem [shape: f32[2,128,256], index: 0, kind: input, shape index: {}, may-alias: {0,1}]   ;;  %s2435_s1 = inlined_call_operand.vmem [shape: f32[2,128,256], index: 1, kind: input, shape index: {}, may-alias: {0,1}]   ;;  %s2436_s2 = inlined_call_operand.vmem [shape: f32[2,256,128], index: 2, kind: input, shape index: {}]   ;;  %s2437_s3 = inlined_call_operand.vmem [shape: bf16[160,128], index: 3, kind: input, shape index: {}]   ;;  %s2438_s4 = inlined_call_operand.vmem [shape: f32[160,1], index: 4, kind: input, shape index: {}]   ;;  %s2439_s5 = inlined_call_operand.<no memory space> [shape: f32[1], index: 5, kind: input, shape index: {}]   ;;  %s2440_s6 = inlined_call_operand.vmem [shape: f32[2,256,128], index: 6, kind: output, shape index: {}]  }
   0x1   :  { %11 = sst [smem:[#allocation2]] %s2439_s5 }
   0x2   :  { %s1912_s23 = smov 0   ;;  %s1914_s24 = smov 0  }
   0x3   :  { %s1916_s25 = smov 0   ;;  %s1918_s26 = smov 0  }
   0x4   :  { %s1920_s27 = smov 0   ;;  %s1922_s28 = smov 0  }
   0x5   :  { %s1924_s29 = smov 0  }
   0x6 LB: > { %s26_s5 = sadd.s32 1, %s1861_s27  ;;  %s29_s30 = sadd.s32 1, %s1865_s28  ;;  %s1869_s29 = sphi %s1924_s29, %s17_s29   ;;  %s1865_s28 = sphi %s1922_s28, %s2446_s28   ;;  %s1861_s27 = sphi %s1920_s27, %s2445_s27   ;;  %s1857_s26 = sphi %s1918_s26, %s2444_s26   ;;  %s1853_s25 = sphi %s1916_s25, %s2443_s25   ;;  %s1849_s24 = sphi %s1914_s24, %s2442_s24   ;;  %s1845_s23 = sphi %s1912_s23, %s2441_s23  }
   0x7   : > { %p27_p0 = scmp.ge.s32.totalorder %s26_s5, 2  ;;  %p71_p1 = scmp.ne.s32.totalorder %s1849_s24, %s1845_s23 }
   0x8   : > { %p72_p2 = scmp.eq.s32.totalorder %s1869_s29, 0  ;;  %s64_s10 = sadd.s32 1, %s1849_s24 }
   0x9   : > { %s2448_s5 = smov (%p27_p0, %s26_s5), 0  ;;  %s2450_s30 = smov (!%p27_p0, %s29_s30), %s1865_s28 }
   0xa   : > { %p73_p3 = por %p72_p2, %p71_p1  ;;  %p31_p4 = scmp.ge.s32.totalorder %s2450_s30, 2 }
   0xb   : > { %s60_s7 = ssub.s32 %s1861_s27, %s2448_s5  ;;  %p1568_p6 = scmp.ge.s32.totalorder %s1869_s29, 4 }
   0xc   : > { %s2452_s30 = smov (%p31_p4, %s2450_s30), 0 }
   0xd   : > { %s59_s8 = ssub.s32 %s1865_s28, %s2452_s30  ;;  %225 = sbr.rel (%p1568_p6) target bundleno = 34 (0x22), region = 28 }
   0xe   : > { %s61_s9 = sor.u32 %s60_s7, %s59_s8 }
   0xf   : > { %p62_p5 = scmp.eq.s32.totalorder %s61_s9, 0 }
  0x11   : > { %s1963_s11 = scalar_select %p62_p5, %s1849_s24, %s64_s10  }
  0x14   : > { %236 = sbr.rel (!%p73_p3) target bundleno = 34 (0x22), region = 36  ;;  %s238_s12 = sand.u32 (%p73_p3), 1, %s1849_s24  }
  0x15   : > { %s1570_s13 = sshll.u32 (%p73_p3), %s1865_s28, 5  ;;  %s1569_s14 = sshll.u32 (%p73_p3), %s238_s12, 7 }
  0x16   : > { %s242_s15 = sadd.s32 (%p73_p3), %s1861_s27, %s1570_s13  ;;  %s240_s20 = scalar_lea.vmem (%p73_p3), [#allocation3], %s1569_s14 }
  0x17   : > { %s1571_s16 = sshll.u32 (%p73_p3), %s242_s15, 3 }
  0x18   : > { %s1972_s19 = scalar_lea.vmem (%p73_p3), %s2435_s1, %s1571_s16 }
  0x19   : > { %v302_v0 = vld [vmem:[%s1972_s19] sm:$0xff] (%p73_p3)  ;;  %v304_v1 = vld [vmem:[%s1972_s19 + $0x10] sm:$0xff] (%p73_p3) }
  0x1a   : > { %v306_v2 = vld [vmem:[%s1972_s19 + $0x20] sm:$0xff] (%p73_p3)  ;;  %303 = vst [vmem:[%s240_s20] sm:$0xff] (%p73_p3), %v302_v0  ;;  %305 = vst [vmem:[%s240_s20 + $0x8] sm:$0xff] (%p73_p3), %v304_v1  ;;  %v308_v3 = vld [vmem:[%s1972_s19 + $0x30] sm:$0xff] (%p73_p3) }
  0x1b   : > { %307 = vst [vmem:[%s240_s20 + $0x10] sm:$0xff] %v306_v2  ;;  %v310_v4 = vld [vmem:[%s1972_s19 + $0x40] sm:$0xff]  ;;  %v312_v5 = vld [vmem:[%s1972_s19 + $0x50] sm:$0xff]  ;;  %309 = vst [vmem:[%s240_s20 + $0x18] sm:$0xff] %v308_v3 }
  0x1c   : > { %311 = vst [vmem:[%s240_s20 + $0x20] sm:$0xff] %v310_v4  ;;  %313 = vst [vmem:[%s240_s20 + $0x28] sm:$0xff] %v312_v5  ;;  %v314_v6 = vld [vmem:[%s1972_s19 + $0x60] sm:$0xff]  ;;  %v316_v7 = vld [vmem:[%s1972_s19 + $0x70] sm:$0xff] }
  0x1d   : > { %v318_v8 = vld [vmem:[%s1972_s19 + $0x80] sm:$0xff]  ;;  %315 = vst [vmem:[%s240_s20 + $0x30] sm:$0xff] %v314_v6  ;;  %317 = vst [vmem:[%s240_s20 + $0x38] sm:$0xff] %v316_v7  ;;  %v320_v9 = vld [vmem:[%s1972_s19 + $0x90] sm:$0xff] }
  0x1e   : > { %319 = vst [vmem:[%s240_s20 + $0x40] sm:$0xff] %v318_v8  ;;  %v322_v10 = vld [vmem:[%s1972_s19 + $0xa0] sm:$0xff]  ;;  %v324_v11 = vld [vmem:[%s1972_s19 + $0xb0] sm:$0xff]  ;;  %321 = vst [vmem:[%s240_s20 + $0x48] sm:$0xff] %v320_v9 }
  0x1f   : > { %323 = vst [vmem:[%s240_s20 + $0x50] sm:$0xff] %v322_v10  ;;  %325 = vst [vmem:[%s240_s20 + $0x58] sm:$0xff] %v324_v11  ;;  %v326_v12 = vld [vmem:[%s1972_s19 + $0xc0] sm:$0xff]  ;;  %v328_v13 = vld [vmem:[%s1972_s19 + $0xd0] sm:$0xff] }
  0x20   : > { %v330_v14 = vld [vmem:[%s1972_s19 + $0xe0] sm:$0xff]  ;;  %327 = vst [vmem:[%s240_s20 + $0x60] sm:$0xff] %v326_v12  ;;  %329 = vst [vmem:[%s240_s20 + $0x68] sm:$0xff] %v328_v13  ;;  %v332_v15 = vld [vmem:[%s1972_s19 + $0xf0] sm:$0xff] }
  0x21   : > { %331 = vst [vmem:[%s240_s20 + $0x70] sm:$0xff] %v330_v14  ;;  %333 = vst [vmem:[%s240_s20 + $0x78] sm:$0xff] %v332_v15 }
  0x22 PF: > { %p1572_p7 = scmp.ge.s32.totalorder %s1869_s29, 1  ;;  %p351_p8 = scmp.lt.s32.totalorder %s1869_s29, 5 }
  0x24   : > { %p352_p9 = pnand %p1572_p7, %p351_p8 }
  0x25   : > { %s358_s21 = sand.u32 (!%p352_p9), 1, %s1845_s23   ;;  %p405_p10 = scmp.lt.s32.totalorder (!%p352_p9), %s1857_s26, 1  ;;  %v1871_v16 = vmov (!%p352_p9), 0.0   ;;  %vm1872_vm0 = vmmov (!%p352_p9), 0   ;;  %v1873_v17 = vmov (!%p352_p9), 0   ;;  %v523_v9 = vld [vmem:[%s2438_s4] sm:$0xff] (!%p352_p9) }
  0x26   : > { %355 = sbr.rel (%p352_p9) target bundleno = 1061 (0x425), region = 78  ;;  %1612 = vmatprep.subr.bf16.mxu1 (!%p352_p9), %v1871_v16  ;;  %s1573_s22 = sshll.u32 (!%p352_p9), %s358_s21, 7  ;;  %1628 = vmatprep.mubr.msk.bf16.mxu1 (!%p352_p9), %vm1872_vm0, %v1871_v16  ;;  %v524_v13 = vld [vmem:[%s2438_s4 + $0x8] sm:$0xff] (!%p352_p9)  ;;  %vm902_vm1 = vcmask (!%p352_p9), 130048  }
  0x27   : > { %719 = vmatprep.mubr.bf16.mxu0 (!%p352_p9), %v1873_v17  ;;  %1707 = vset.pattern.permute.xlu0 (!%p352_p9), %v1873_v17  ;;  %s1998_s7 = scalar_lea.vmem (!%p352_p9), [#allocation3], %s1573_s22  ;;  %s1345_s9 = sld [smem:[#allocation2]] (!%p352_p9) }
  0x28   : > { %v479_v18 = vld [vmem:[%s1998_s7] sm:$0xff] (!%p352_p9)  ;;  %v480_v19 = vld [vmem:[%s1998_s7 + $0x8] sm:$0xff] (!%p352_p9)  ;;  %v481_v20 = vld [vmem:[%s1998_s7 + $0x10] sm:$0xff] (!%p352_p9)  ;;  %1708 = vset.pattern.permute.xlu1 (!%p352_p9), %v1873_v17  ;;  %830 = vperm.xlu0 (!%p352_p9), %1707, %v523_v9  }
  0x29   : > { %v495_v21 = vpack.c.bf16 (!%p352_p9), %v480_v19, %v479_v18  ;;  %v482_v22 = vld [vmem:[%s1998_s7 + $0x18] sm:$0xff] (!%p352_p9)  ;;  %v483_v24 = vld [vmem:[%s1998_s7 + $0x20] sm:$0xff] (!%p352_p9)  ;;  %v484_v25 = vld [vmem:[%s1998_s7 + $0x28] sm:$0xff] (!%p352_p9) }
  0x2a   : > { %v496_v23 = vpack.c.bf16 (!%p352_p9), %v482_v22, %v481_v20  ;;  %v485_v30 = vld [vmem:[%s1998_s7 + $0x30] sm:$0xff] (!%p352_p9)  ;;  %v497_v34 = vpack.c.bf16 (!%p352_p9), %v484_v25, %v483_v24  ;;  %v486_v38 = vld [vmem:[%s1998_s7 + $0x38] sm:$0xff] (!%p352_p9)  ;;  %v487_v49 = vld [vmem:[%s1998_s7 + $0x40] sm:$0xff] (!%p352_p9) }
  0x2b   : > { %1613 = vmatpush3.bf16.msra.mxu1 (!%p352_p9), %v495_v21  ;;  %v498_v46 = vpack.c.bf16 (!%p352_p9), %v486_v38, %v485_v30  ;;  %v488_v50 = vld [vmem:[%s1998_s7 + $0x48] sm:$0xff] (!%p352_p9)  ;;  %v489_v52 = vld [vmem:[%s1998_s7 + $0x50] sm:$0xff] (!%p352_p9)  ;;  %v490_v57 = vld [vmem:[%s1998_s7 + $0x58] sm:$0xff] (!%p352_p9) }
  0x2c   : > { %1614 = vmatprep.subr.bf16.mxu1 (!%p352_p9), %v1871_v16  ;;  %v499_v56 = vpack.c.bf16 (!%p352_p9), %v488_v50, %v487_v49  ;;  %v491_v63 = vld [vmem:[%s1998_s7 + $0x60] sm:$0xff] (!%p352_p9)  ;;  %v492_v0 = vld [vmem:[%s1998_s7 + $0x68] sm:$0xff] (!%p352_p9)  ;;  %v500_v3 = vpack.c.bf16 (!%p352_p9), %v490_v57, %v489_v52  ;;  %v493_v14 = vld [vmem:[%s1998_s7 + $0x70] sm:$0xff] (!%p352_p9)  ;;  %835 = vperm.xlu0 (!%p352_p9), %1707, %v524_v13  }
  0x2d   : > { %s2454_s26 = smov (!%p405_p10, %s1857_s26), 1  ;;  %v501_v12 = vpack.c.bf16 %v492_v0, %v491_v63  ;;  %v494_v15 = vld [vmem:[%s1998_s7 + $0x78] sm:$0xff]  ;;  %v525_v18 = vld [vmem:[%s2438_s4 + $0x10] sm:$0xff]  ;;  %v531_v38 = vld [vmem:[%s2438_s4 + $0x40] sm:$0xff] }
  0x2e   : > { %s1602_s23 = sshll.u32 %s2454_s26, 8  ;;  %545 = vperm.xlu1 %1708, %v525_v18   ;;  %v502_v24 = vpack.c.bf16 %v494_v15, %v493_v14  ;;  %v1715_v49 = vld [vmem:[%s2437_s3 + $0x30] sm:$0xff]   ;;  %v1717_v52 = vld [vmem:[%s2437_s3 + $0x40] sm:$0xff]   ;;  %s1577_s8 = sshll.u32 %s2454_s26, 5 }
  0x2f   : > { %s2012_s10 = scalar_lea.vmem %s2434_s0, %s1602_s23  ;;  %1615 = vmatpush3.bf16.msra.mxu1 %v496_v23  ;;  %v526_v23 = vld [vmem:[%s2438_s4 + $0x18] sm:$0xff]  ;;  %v541_v50 = vld [vmem:[%s2438_s4 + $0x90] sm:$0xff]  ;;  %s1576_s23 = sshll.u32 %s1853_s25, 4 }
  0x30   : > { %v432_v26 = vld [vmem:[%s2012_s10 + $0x8] sm:$0xff]  ;;  %v434_v27 = vld [vmem:[%s2012_s10 + $0x18] sm:$0xff]  ;;  %v431_v28 = vld [vmem:[%s2012_s10] sm:$0xff]  ;;  %1616 = vmatprep.subr.bf16.mxu1 %v1871_v16  ;;  %p413_p11 = scmp.lt.s32.totalorder %s1576_s23, 31 }
  0x31   : > { %v433_v29 = vld [vmem:[%s2012_s10 + $0x10] sm:$0xff]  ;;  %v464_v31 = vpack.c.bf16 %v434_v27, %v432_v26  ;;  %v436_v33 = vld [vmem:[%s2012_s10 + $0x28] sm:$0xff]  ;;  %v438_v35 = vld [vmem:[%s2012_s10 + $0x38] sm:$0xff] }
  0x32   : > { %v463_v32 = vpack.c.bf16 %v433_v29, %v431_v28  ;;  %v435_v36 = vld [vmem:[%s2012_s10 + $0x20] sm:$0xff]  ;;  %v437_v37 = vld [vmem:[%s2012_s10 + $0x30] sm:$0xff]  ;;  %v466_v39 = vpack.c.bf16 %v438_v35, %v436_v33  ;;  %v440_v40 = vld [vmem:[%s2012_s10 + $0x48] sm:$0xff]  ;;  %550 = vperm.xlu1 %1708, %v526_v23   ;;  %s2456_s23 = smov (!%p413_p11, %s1576_s23), 31 }
  0x33   : > { %687 = vmatprep.subr.bf16.mxu0 %v464_v31  ;;  %v442_v41 = vld [vmem:[%s2012_s10 + $0x58] sm:$0xff]  ;;  %v465_v42 = vpack.c.bf16 %v437_v37, %v435_v36  ;;  %v439_v44 = vld [vmem:[%s2012_s10 + $0x40] sm:$0xff]  ;;  %v441_v45 = vld [vmem:[%s2012_s10 + $0x50] sm:$0xff]  ;;  %1617 = vmatpush3.bf16.msra.mxu1 %v497_v34  ;;  %s416_s12 = sadd.s32 %s1577_s8, %s2456_s23 }
  0x34   : > { %688 = vmatpush1.bf16.msra.mxu0 %v463_v32  ;;  %v468_v43 = vpack.c.bf16 %v442_v41, %v440_v40  ;;  %v444_v47 = vld [vmem:[%s2012_s10 + $0x68] sm:$0xff]  ;;  %v446_v48 = vld [vmem:[%s2012_s10 + $0x78] sm:$0xff]  ;;  %1618 = vmatprep.subr.bf16.mxu1 %v1871_v16  ;;  %v467_v51 = vpack.c.bf16 %v441_v45, %v439_v44  ;;  %v443_v54 = vld [vmem:[%s2012_s10 + $0x60] sm:$0xff] }
  0x35   : > { %689 = vmatprep.subr.bf16.mxu0 %v466_v39  ;;  %v470_v53 = vpack.c.bf16 %v446_v48, %v444_v47  ;;  %v445_v55 = vld [vmem:[%s2012_s10 + $0x70] sm:$0xff]  ;;  %v448_v58 = vld [vmem:[%s2012_s10 + $0x88] sm:$0xff]  ;;  %v450_v59 = vld [vmem:[%s2012_s10 + $0x98] sm:$0xff] }
  0x36   : > { %v447_v60 = vld [vmem:[%s2012_s10 + $0x80] sm:$0xff]  ;;  %v469_v61 = vpack.c.bf16 %v445_v55, %v443_v54  ;;  %v449_v62 = vld [vmem:[%s2012_s10 + $0x90] sm:$0xff]  ;;  %v472_v1 = vpack.c.bf16 %v450_v59, %v448_v58  ;;  %v452_v2 = vld [vmem:[%s2012_s10 + $0xa8] sm:$0xff] }
  0x37   : > { %1619 = vmatpush3.bf16.msra.mxu1 %v498_v46  ;;  %v454_v4 = vld [vmem:[%s2012_s10 + $0xb8] sm:$0xff]  ;;  %v451_v5 = vld [vmem:[%s2012_s10 + $0xa0] sm:$0xff]  ;;  %v453_v6 = vld [vmem:[%s2012_s10 + $0xb0] sm:$0xff]  ;;  %v471_v7 = vpack.c.bf16 %v449_v62, %v447_v60 }
  0x38   : > { %690 = vmatpush1.bf16.msra.mxu0 %v465_v42  ;;  %1620 = vmatprep.subr.bf16.mxu1 %v1871_v16  ;;  %v456_v8 = vld [vmem:[%s2012_s10 + $0xc8] sm:$0xff]  ;;  %v474_v10 = vpack.c.bf16 %v454_v4, %v452_v2  ;;  %v458_v11 = vld [vmem:[%s2012_s10 + $0xd8] sm:$0xff]  ;;  %v473_v19 = vpack.c.bf16 %v453_v6, %v451_v5  ;;  %v455_v21 = vld [vmem:[%s2012_s10 + $0xc0] sm:$0xff] }
  0x39   : > { %691 = vmatprep.subr.bf16.mxu0 %v468_v43  ;;  %v476_v20 = vpack.c.bf16 %v458_v11, %v456_v8  ;;  %v457_v22 = vld [vmem:[%s2012_s10 + $0xd0] sm:$0xff]  ;;  %v460_v25 = vld [vmem:[%s2012_s10 + $0xe8] sm:$0xff]  ;;  %v462_v26 = vld [vmem:[%s2012_s10 + $0xf8] sm:$0xff] }
  0x3a   : > { %v1709_v27 = vld [vmem:[%s2437_s3] sm:$0xff]   ;;  %v475_v28 = vpack.c.bf16 %v457_v22, %v455_v21  ;;  %v478_v29 = vpack.c.bf16 %v462_v26, %v460_v25  ;;  %v461_v31 = vld [vmem:[%s2012_s10 + $0xf0] sm:$0xff]  ;;  %v1710_v34 = vld [vmem:[%s2437_s3 + $0x8] sm:$0xff]  }
  0x3b   : > { %1621 = vmatpush3.bf16.msra.mxu1 %v499_v56  ;;  %v459_v30 = vld [vmem:[%s2012_s10 + $0xe0] sm:$0xff]  ;;  %v529_v35 = vld [vmem:[%s2438_s4 + $0x30] sm:$0xff]  ;;  %v530_v36 = vld [vmem:[%s2438_s4 + $0x38] sm:$0xff]  ;;  %s1578_s10 = sshll.u32 %s416_s12, 3 }
  0x3c   : > { %692 = vmatpush1.bf16.msra.mxu0 %v467_v51  ;;  %1622 = vmatprep.subr.bf16.mxu1 %v1871_v16  ;;  %v527_v32 = vld [vmem:[%s2438_s4 + $0x20] sm:$0xff]  ;;  %v477_v33 = vpack.c.bf16 %v461_v31, %v459_v30  ;;  %v1711_v37 = vld [vmem:[%s2437_s3 + $0x10] sm:$0xff]   ;;  %v532_v39 = vld [vmem:[%s2438_s4 + $0x48] sm:$0xff]  ;;  %s2355_s15 = scalar_lea.vmem %s2436_s2, %s1578_s10  ;;  %s2363_s16 = scalar_lea.vmem %s2440_s6, %s1578_s10 }
  0x3d   : > { %693 = vmatprep.subr.bf16.mxu0 %v470_v53  ;;  %555 = vperm.xlu1 %1708, %v527_v32   ;;  %v1712_v40 = vld [vmem:[%s2437_s3 + $0x18] sm:$0xff]   ;;  %v533_v41 = vld [vmem:[%s2438_s4 + $0x50] sm:$0xff]  ;;  %v1713_v43 = vld [vmem:[%s2437_s3 + $0x20] sm:$0xff]  }
  0x3e   : > { %v534_v42 = vld [vmem:[%s2438_s4 + $0x58] sm:$0xff]  ;;  %v536_v44 = vld [vmem:[%s2438_s4 + $0x68] sm:$0xff]  ;;  %v537_v45 = vld [vmem:[%s2438_s4 + $0x70] sm:$0xff] }
  0x3f   : > { %1623 = vmatpush3.bf16.msra.mxu1 %v500_v3  ;;  %v1714_v46 = vld [vmem:[%s2437_s3 + $0x28] sm:$0xff]   ;;  %v538_v47 = vld [vmem:[%s2438_s4 + $0x78] sm:$0xff]  ;;  %v539_v48 = vld [vmem:[%s2438_s4 + $0x80] sm:$0xff] }
  0x40   : > { %694 = vmatpush1.bf16.msra.mxu0 %v469_v61  ;;  %1624 = vmatprep.subr.bf16.mxu1 %v1871_v16  ;;  %v1716_v51 = vld [vmem:[%s2437_s3 + $0x38] sm:$0xff]   ;;  %v1718_v53 = vld [vmem:[%s2437_s3 + $0x48] sm:$0xff]  }
  0x41   : > { %695 = vmatprep.subr.bf16.mxu0 %v472_v1 }
  0x43   : > { %1625 = vmatpush3.bf16.msra.mxu1 %v501_v12 }
  0x44   : > { %696 = vmatpush1.bf16.msra.mxu0 %v471_v7  ;;  %1626 = vmatprep.subr.bf16.mxu1 %v1871_v16  ;;  %v528_v16 = vld [vmem:[%s2438_s4 + $0x28] sm:$0xff] }
  0x45   : > { %697 = vmatprep.subr.bf16.mxu0 %v474_v10  ;;  %560 = vperm.xlu1 %1708, %v528_v16  }
  0x47   : > { %1627 = vmatpush3.bf16.msra.mxu1 %v502_v24 }
  0x48   : > { %698 = vmatpush1.bf16.msra.mxu0 %v473_v19 }
  0x49   : > { %699 = vmatprep.subr.bf16.mxu0 %v476_v20  ;;  %565 = vperm.xlu1 %1708, %v529_v35  }
  0x4a   : > { %1629 = vmatmul.mubr.bf16.vlgmr.msra.gmra.mrb[0].mxu1 %v1709_v27 }
  0x4b   : > { %959 = vmatprep.mubr.bf16.mxu1 %v1873_v17 }
  0x4c   : > { %700 = vmatpush1.bf16.msra.mxu0 %v475_v28 }
  0x4d   : > { %701 = vmatprep.subr.bf16.mxu0 %v478_v29  ;;  %570 = vperm.xlu1 %1708, %v530_v36  }
  0x50   : > { %702 = vmatpush1.bf16.msra.mxu0 %v477_v33 }
  0x51   : > { %575 = vperm.xlu1 %1708, %v531_v38  }
  0x53   : > { %720 = vmatmul.mubr.bf16.vlgmr.msra.gmra.mrb[0].mxu0 %v1710_v34 }
  0x54   : > { %729 = vmatprep.mubr.bf16.mxu0 %v1873_v17 }
  0x55   : > { %580 = vperm.xlu1 %1708, %v532_v39  }
  0x59   : > { %585 = vperm.xlu1 %1708, %v533_v41  }
  0x5b   : > { %730 = vmatmul.mubr.bf16.gmra.mrb[4].mxu0 %v1711_v37 }
  0x5c   : > { %739 = vmatprep.mubr.bf16.mxu0 %v1873_v17 }
  0x5d   : > { %590 = vperm.xlu1 %1708, %v534_v42  }
  0x61   : > { %600 = vperm.xlu1 %1708, %v536_v44  }
  0x63   : > { %740 = vmatmul.mubr.bf16.gmra.mrb[8].mxu0 %v1712_v40 }
  0x64   : > { %749 = vmatprep.mubr.bf16.mxu0 %v1873_v17 }
  0x65   : > { %605 = vperm.xlu1 %1708, %v537_v45  }
  0x69   : > { %610 = vperm.xlu1 %1708, %v538_v47  }
  0x6b   : > { %750 = vmatmul.mubr.bf16.gmra.mrb[12].mxu0 %v1713_v43 }
  0x6c   : > { %759 = vmatprep.mubr.bf16.mxu0 %v1873_v17 }
  0x6d   : > { %615 = vperm.xlu1 %1708, %v539_v48  }
  0x71   : > { %625 = vperm.xlu1 %1708, %v541_v50  }
  0x73   : > { %760 = vmatmul.mubr.bf16.gmra.mrb[16].mxu0 %v1714_v46 }
  0x74   : > { %769 = vmatprep.mubr.bf16.mxu0 %v1873_v17 }
  0x7b   : > { %770 = vmatmul.mubr.bf16.gmra.mrb[20].mxu0 %v1715_v49 }
  0x7c   : > { %779 = vmatprep.mubr.bf16.mxu0 %v1873_v17 }
  0x83   : > { %780 = vmatmul.mubr.bf16.gmra.mrb[24].mxu0 %v1716_v51 }
  0x84   : > { %789 = vmatprep.mubr.bf16.mxu0 %v1873_v17 }
  0x8b   : > { %790 = vmatmul.mubr.bf16.gmra.mrb[28].mxu0 %v1717_v52 }
  0x8c   : > { %799 = vmatprep.mubr.bf16.mxu0 %v1873_v17 }
  0x93   : > { %800 = vmatmul.mubr.bf16.gmra.mrb[32].mxu0 %v1718_v53 }
  0xa7   : > { %v831_v56 = vpop.permute.xlu0 %830 }
  0xab   : > { %v836_v59 = vpop.permute.xlu0 %835 }
  0xad   : > { %v546_v54 = vpop.permute.xlu1 %545 }
  0xb1   : > { %v551_v55 = vpop.permute.xlu1 %550 }
  0xbc   : > { %v556_v57 = vpop.permute.xlu1 %555 }
  0xc4   : > { %v561_v62 = vpop.permute.xlu1 %560 }
  0xc8   : > { %v566_v6 = vpop.permute.xlu1 %565 }
  0xcc   : > { %v571_v14 = vpop.permute.xlu1 %570 }
  0xd0   : > { %v576_v26 = vpop.permute.xlu1 %575 }
  0xd4   : > { %v581_v34 = vpop.permute.xlu1 %580 }
  0xd8   : > { %v586_v41 = vpop.permute.xlu1 %585 }
  0xdc   : > { %v591_v49 = vpop.permute.xlu1 %590 }
 0x11d   : > { %v878_v58 = vpop.f32.mrb[0].mxu1 }
 0x11e   : > { %v1630_v60 = vpop.f32.mrb[1].mxu1  ;;  %v879_v63 = vadd.f32 %v878_v58, %v831_v56 }
 0x11f   : > { %v881_v61 = vpop.f32.mrb[2].mxu1  ;;  %v601_v60 = vpop.permute.xlu1 %600 }
 0x120   : > { %v882_v0 = vadd.f32 %v881_v61, %v836_v59  ;;  %v1631_v1 = vpop.f32.mrb[3].mxu1 }
 0x122   : > { %v885_v2 = vpack.c.bf16 %v882_v0, %v879_v63 }
 0x124   : > { %886 = vxpose.xlu0.c.b16.start.end [1/1] (short) %v885_v2, 128 }
 0x126   : > { %v721_v3 = vpop.f32.mrb[0].mxu0 }
 0x127   : > { %v722_v4 = vadd.f32 %v721_v3, %v546_v54  ;;  %v723_v5 = vpop.f32.mrb[1].mxu0  ;;  %v606_v3 = vpop.permute.xlu1 %605 }
 0x128   : > { %v724_v7 = vadd.f32 %v723_v5, %v546_v54  ;;  %v725_v8 = vpop.f32.mrb[2].mxu0 }
 0x129   : > { %v726_v9 = vadd.f32 %v725_v8, %v551_v55  ;;  %v727_v10 = vpop.f32.mrb[3].mxu0 }
 0x12a   : > { %v728_v11 = vadd.f32 %v727_v10, %v551_v55  ;;  %v535_v55 = vld [vmem:[%s2438_s4 + $0x60] sm:$0xff] }
 0x12b   : > { %v810_v12 = vpack.c.bf16 %v726_v9, %v722_v4 }
 0x12c   : > { %v811_v13 = vpack.c.bf16 %v728_v11, %v724_v7  ;;  %v611_v7 = vpop.permute.xlu1 %610 }
 0x12e   : > { %v731_v15 = vpop.f32.mrb[4].mxu0  ;;  %927 = vmatprep.subr.bf16.mxu1 %v811_v13 }
 0x12f   : > { %v732_v18 = vadd.f32 %v731_v15, %v556_v57  ;;  %v733_v19 = vpop.f32.mrb[5].mxu0  ;;  %928 = vmatpush1.bf16.msra.mxu1 %v810_v12 }
 0x130   : > { %v734_v20 = vadd.f32 %v733_v19, %v556_v57  ;;  %v735_v21 = vpop.f32.mrb[6].mxu0 }
 0x131   : > { %v736_v22 = vadd.f32 %v735_v21, %v561_v62  ;;  %v737_v23 = vpop.f32.mrb[7].mxu0 }
 0x132   : > { %v738_v24 = vadd.f32 %v737_v23, %v561_v62  ;;  %v540_v62 = vld [vmem:[%s2438_s4 + $0x88] sm:$0xff] }
 0x133   : > { %v2155_v25 = vpack.c.bf16 %v736_v22, %v732_v18 }
 0x134   : > { %v813_v27 = vpack.c.bf16 %v738_v24, %v734_v20 }
 0x136   : > { %v741_v28 = vpop.f32.mrb[8].mxu0  ;;  %1248 = vmatprep.subr.bf16.mxu0 %v813_v27  ;;  %1632 = vmatprep.subr.bf16.mxu1 %v813_v27 }
 0x137   : > { %v742_v29 = vadd.f32 %v741_v28, %v566_v6  ;;  %v743_v30 = vpop.f32.mrb[9].mxu0  ;;  %1249 = vmatpush1.bf16.xpose.msra.mxu0 %v2155_v25 }
 0x138   : > { %v744_v31 = vadd.f32 %v743_v30, %v566_v6  ;;  %v745_v32 = vpop.f32.mrb[10].mxu0 }
 0x139   : > { %v746_v33 = vadd.f32 %v745_v32, %v571_v14  ;;  %v747_v16 = vpop.f32.mrb[11].mxu0 }
 0x13a   : > { %v748_v35 = vadd.f32 %v747_v16, %v571_v14 }
 0x13b   : > { %v2158_v36 = vpack.c.bf16 %v746_v33, %v742_v29 }
 0x13c   : > { %v815_v37 = vpack.c.bf16 %v748_v35, %v744_v31  ;;  %v616_v35 = vpop.permute.xlu1 %615 }
 0x13e   : > { %v751_v38 = vpop.f32.mrb[12].mxu0  ;;  %1250 = vmatprep.subr.bf16.mxu0 %v815_v37 }
 0x13f   : > { %v752_v39 = vadd.f32 %v751_v38, %v576_v26  ;;  %v753_v40 = vpop.f32.mrb[13].mxu0  ;;  %1251 = vmatpush1.bf16.xpose.msra.mxu0 %v2158_v36 }
 0x140   : > { %v754_v42 = vadd.f32 %v753_v40, %v576_v26  ;;  %v755_v43 = vpop.f32.mrb[14].mxu0 }
 0x141   : > { %v756_v44 = vadd.f32 %v755_v43, %v581_v34  ;;  %v757_v45 = vpop.f32.mrb[15].mxu0 }
 0x142   : > { %v758_v46 = vadd.f32 %v757_v45, %v581_v34 }
 0x143   : > { %v816_v47 = vpack.c.bf16 %v756_v44, %v752_v39 }
 0x144   : > { %v817_v48 = vpack.c.bf16 %v758_v46, %v754_v42 }
 0x146   : > { %v761_v50 = vpop.f32.mrb[16].mxu0  ;;  %1252 = vmatprep.subr.bf16.mxu0 %v817_v48 }
 0x147   : > { %v762_v51 = vadd.f32 %v761_v50, %v586_v41  ;;  %v763_v52 = vpop.f32.mrb[17].mxu0  ;;  %1253 = vmatpush1.bf16.xpose.msra.mxu0 %v816_v47 }
 0x148   : > { %v764_v53 = vadd.f32 %v763_v52, %v586_v41  ;;  %v765_v54 = vpop.f32.mrb[18].mxu0 }
 0x149   : > { %v766_v56 = vadd.f32 %v765_v54, %v591_v49  ;;  %v767_v57 = vpop.f32.mrb[19].mxu0  ;;  %595 = vperm.xlu0 %1707, %v535_v55  }
 0x14a   : > { %v768_v58 = vadd.f32 %v767_v57, %v591_v49 }
 0x14b   : > { %v818_v59 = vpack.c.bf16 %v766_v56, %v762_v51 }
 0x14c   : > { %v819_v61 = vpack.c.bf16 %v768_v58, %v764_v53 }
 0x14d   : > { %620 = vperm.xlu0 %1707, %v540_v62  }
 0x14e   : > { %v771_v63 = vpop.f32.mrb[20].mxu0  ;;  %1254 = vmatprep.subr.bf16.mxu0 %v819_v61 }
 0x14f   : > { %v773_v0 = vpop.f32.mrb[21].mxu0  ;;  %1255 = vmatpush1.bf16.xpose.msra.mxu0 %v818_v59 }
 0x150   : > { %v775_v1 = vpop.f32.mrb[22].mxu0 }
 0x151   : > { %v777_v2 = vpop.f32.mrb[23].mxu0  ;;  %v776_v32 = vadd.f32 %v775_v1, %v601_v60 }
 0x152   : > { %v778_v33 = vadd.f32 %v777_v2, %v601_v60 }
 0x156   : > { %v781_v4 = vpop.f32.mrb[24].mxu0 }
 0x157   : > { %v782_v5 = vadd.f32 %v781_v4, %v606_v3  ;;  %v783_v6 = vpop.f32.mrb[25].mxu0 }
 0x158   : > { %v784_v8 = vadd.f32 %v783_v6, %v606_v3  ;;  %v785_v9 = vpop.f32.mrb[26].mxu0 }
 0x159   : > { %v786_v10 = vadd.f32 %v785_v9, %v611_v7  ;;  %v787_v11 = vpop.f32.mrb[27].mxu0 }
 0x15a   : > { %v788_v12 = vadd.f32 %v787_v11, %v611_v7 }
 0x15b   : > { %v822_v13 = vpack.c.bf16 %v786_v10, %v782_v5 }
 0x15c   : > { %v823_v14 = vpack.c.bf16 %v788_v12, %v784_v8 }
 0x15e   : > { %v791_v15 = vpop.f32.mrb[28].mxu0 }
 0x15f   : > { %v793_v18 = vpop.f32.mrb[29].mxu0  ;;  %v792_v38 = vadd.f32 %v791_v15, %v616_v35 }
 0x160   : > { %v795_v19 = vpop.f32.mrb[30].mxu0  ;;  %v794_v40 = vadd.f32 %v793_v18, %v616_v35 }
 0x161   : > { %v797_v20 = vpop.f32.mrb[31].mxu0 }
 0x166   : > { %v2167_v21 = vpop.f32.mrb[32].mxu0 }
 0x167   : > { %v2169_v22 = vpop.f32.mrb[33].mxu0 }
 0x168   : > { %v2237_v4 = vpop.f32.mrb[34].mxu0 }
 0x169   : > { %v807_v6 = vpop.f32.mrb[35].mxu0 }
 0x18a   : > { %v894_v23 = vpop.trf.xlu0 }
 0x18b   : > { %1592 = vmatmul.mubr.msk.bf16.vlgmr.msra.gmra.mrb[4].mxu1 %vm902_vm1, %v894_v23 }
 0x18c   : > { %1640 = vmatpush1.bf16.xpose.msra.mxu1 %v2155_v25  ;;  %969 = vmatprep.mubr.bf16.mxu1 %v1873_v17 }
 0x18d   : > { %1633 = vmatprep.subr.bf16.mxu1 %v815_v37 }
 0x18e   : > { %v895_v24 = vpop.trf.xlu0 }
 0x192   : > { %v896_v26 = vpop.trf.xlu0 }
 0x193   : > { %1593 = vmatmul.mubr.msk.bf16.gmra.mrb[8].mxu1 %vm902_vm1, %v895_v24 }
 0x194   : > { %1641 = vmatpush1.bf16.xpose.msra.mxu1 %v2158_v36  ;;  %979 = vmatprep.mubr.bf16.mxu1 %v1873_v17 }
 0x195   : > { %1634 = vmatprep.subr.bf16.mxu1 %v817_v48 }
 0x196   : > { %v897_v27 = vpop.trf.xlu0 }
 0x19a   : > { %v898_v25 = vpop.trf.xlu0 }
 0x19b   : > { %1594 = vmatmul.mubr.msk.bf16.gmra.mrb[12].mxu1 %vm902_vm1, %v896_v26 }
 0x19c   : > { %1642 = vmatpush1.bf16.xpose.msra.mxu1 %v816_v47  ;;  %989 = vmatprep.mubr.bf16.mxu1 %v1873_v17 }
 0x19d   : > { %1635 = vmatprep.subr.bf16.mxu1 %v819_v61 }
 0x19e   : > { %v899_v28 = vpop.trf.xlu0 }
 0x1a2   : > { %v900_v29 = vpop.trf.xlu0 }
 0x1a3   : > { %1595 = vmatmul.mubr.msk.bf16.gmra.mrb[16].mxu1 %vm902_vm1, %v897_v27 }
 0x1a4   : > { %1643 = vmatpush1.bf16.xpose.msra.mxu1 %v818_v59  ;;  %999 = vmatprep.mubr.bf16.mxu1 %v1873_v17 }
 0x1a6   : > { %v901_v30 = vpop.trf.xlu0 }
 0x1ab   : > { %1596 = vmatmul.mubr.msk.bf16.gmra.mrb[20].mxu1 %vm902_vm1, %v898_v25 }
 0x1ac   : > { %1009 = vmatprep.mubr.bf16.mxu1 %v1873_v17 }
 0x1b3   : > { %1597 = vmatmul.mubr.msk.bf16.gmra.mrb[24].mxu1 %vm902_vm1, %v899_v28 }
 0x1b4   : > { %1019 = vmatprep.mubr.bf16.mxu1 %v1873_v17 }
 0x1bb   : > { %1598 = vmatmul.mubr.msk.bf16.gmra.mrb[28].mxu1 %vm902_vm1, %v900_v29 }
 0x1bc   : > { %1029 = vmatprep.mubr.bf16.mxu1 %v1873_v17 }
 0x1c3   : > { %1599 = vmatmul.mubr.msk.bf16.gmra.mrb[32].mxu1 %vm902_vm1, %v901_v30 }
 0x1c8   : > { %v596_v31 = vpop.permute.xlu0 %595 }
 0x1c9   : > { %v772_v16 = vadd.f32 %v771_v63, %v596_v31  ;;  %v774_v34 = vadd.f32 %v773_v0, %v596_v31  ;;  %v542_v63 = vld [vmem:[%s2438_s4 + $0x98] sm:$0xff] }
 0x1cb   : > { %v820_v36 = vpack.c.bf16 %v776_v32, %v772_v16  ;;  %v821_v37 = vpack.c.bf16 %v778_v33, %v774_v34  ;;  %v626_v34 = vpop.permute.xlu1 %625 }
 0x1cc   : > { %v621_v39 = vpop.permute.xlu0 %620 }
 0x1cd   : > { %v796_v41 = vadd.f32 %v795_v19, %v621_v39  ;;  %v798_v42 = vadd.f32 %v797_v20, %v621_v39  ;;  %1256 = vmatprep.subr.bf16.mxu0 %v821_v37  ;;  %1636 = vmatprep.subr.bf16.mxu1 %v821_v37 }
 0x1ce   : > { %1257 = vmatpush1.bf16.xpose.msra.mxu0 %v820_v36  ;;  %1644 = vmatpush1.bf16.xpose.msra.mxu1 %v820_v36 }
 0x1cf   : > { %v824_v17 = vpack.c.bf16 %v796_v41, %v792_v38  ;;  %v825_v43 = vpack.c.bf16 %v798_v42, %v794_v40  ;;  %1258 = vmatprep.subr.bf16.mxu0 %v823_v14  ;;  %1637 = vmatprep.subr.bf16.mxu1 %v823_v14 }
 0x1d6   : > { %1259 = vmatpush1.bf16.xpose.msra.mxu0 %v822_v13  ;;  %1645 = vmatpush1.bf16.xpose.msra.mxu1 %v822_v13 }
 0x1d7   : > { %1260 = vmatprep.subr.bf16.mxu0 %v825_v43  ;;  %1638 = vmatprep.subr.bf16.mxu1 %v825_v43 }
 0x1de   : > { %1261 = vmatpush1.bf16.xpose.msra.mxu0 %v824_v17  ;;  %1646 = vmatpush1.bf16.xpose.msra.mxu1 %v824_v17 }
 0x25e   : > { %v2188_v44 = vpop.f32.mrb[4].mxu1 }
 0x25f   : > { %v2190_v45 = vpop.f32.mrb[5].mxu1 }
 0x260   : > { %v2192_v46 = vpop.f32.mrb[6].mxu1  ;;  %v1040_v47 = vmax.f32 %v2188_v44, %v2190_v45 }
 0x261   : > { %v2196_v48 = vpop.f32.mrb[7].mxu1 }
 0x262   : > { %1041 = vmax.xlane.f32.xlu1 %v1040_v47  ;;  %v1043_v49 = vmax.f32 %v2192_v46, %v2196_v48 }
 0x264   : > { %1044 = vmax.xlane.f32.xlu0 %v1043_v49 }
 0x266   : > { %v2200_v50 = vpop.f32.mrb[8].mxu1 }
 0x267   : > { %v2202_v51 = vpop.f32.mrb[9].mxu1 }
 0x268   : > { %v1046_v52 = vmax.f32 %v2200_v50, %v2202_v51  ;;  %v2206_v53 = vpop.f32.mrb[10].mxu1 }
 0x269   : > { %v2208_v54 = vpop.f32.mrb[11].mxu1 }
 0x26a   : > { %1047 = vmax.xlane.f32.xlu1 %v1046_v52  ;;  %v1049_v55 = vmax.f32 %v2206_v53, %v2208_v54  ;;  %v804_v52 = vadd.f32 %v2169_v22, %v626_v34 }
 0x26e   : > { %v2212_v56 = vpop.f32.mrb[12].mxu1 }
 0x26f   : > { %v2214_v57 = vpop.f32.mrb[13].mxu1 }
 0x270   : > { %v2216_v58 = vpop.f32.mrb[14].mxu1  ;;  %v1052_v59 = vmax.f32 %v2212_v56, %v2214_v57 }
 0x271   : > { %v2220_v60 = vpop.f32.mrb[15].mxu1 }
 0x272   : > { %v1055_v61 = vmax.f32 %v2216_v58, %v2220_v60 }
 0x276   : > { %v2224_v62 = vpop.f32.mrb[16].mxu1 }
 0x277   : > { %v2229_v0 = vpop.f32.mrb[17].mxu1 }
 0x278   : > { %v2231_v1 = vpop.f32.mrb[18].mxu1  ;;  %v1058_v2 = vmax.f32 %v2224_v62, %v2229_v0 }
 0x279   : > { %v2235_v3 = vpop.f32.mrb[19].mxu1 }
 0x27a   : > { %630 = vperm.xlu0 %1707, %v542_v63   ;;  %v1061_v5 = vmax.f32 %v2231_v1, %v2235_v3 }
 0x27e   : > { %v2241_v7 = vpop.f32.mrb[20].mxu1 }
 0x27f   : > { %v2243_v8 = vpop.f32.mrb[21].mxu1 }
 0x280   : > { %v1064_v9 = vmax.f32 %v2241_v7, %v2243_v8  ;;  %v2247_v10 = vpop.f32.mrb[22].mxu1 }
 0x281   : > { %v2249_v11 = vpop.f32.mrb[23].mxu1 }
 0x282   : > { %1065 = vmax.xlane.f32.xlu1 %v1064_v9  ;;  %v1067_v12 = vmax.f32 %v2247_v10, %v2249_v11 }
 0x286   : > { %1068 = vmax.xlane.f32.xlu1 %v1067_v12  ;;  %v2253_v13 = vpop.f32.mrb[24].mxu1 }
 0x287   : > { %v2255_v14 = vpop.f32.mrb[25].mxu1 }
 0x288   : > { %v1070_v15 = vmax.f32 %v2253_v13, %v2255_v14  ;;  %v2259_v18 = vpop.f32.mrb[26].mxu1 }
 0x289   : > { %v2261_v19 = vpop.f32.mrb[27].mxu1 }
 0x28a   : > { %1071 = vmax.xlane.f32.xlu1 %v1070_v15  ;;  %v1073_v20 = vmax.f32 %v2259_v18, %v2261_v19 }
 0x28e   : > { %1074 = vmax.xlane.f32.xlu1 %v1073_v20  ;;  %v2265_v23 = vpop.f32.mrb[28].mxu1 }
 0x28f   : > { %v2267_v24 = vpop.f32.mrb[29].mxu1 }
 0x290   : > { %v1076_v26 = vmax.f32 %v2265_v23, %v2267_v24  ;;  %v2271_v27 = vpop.f32.mrb[30].mxu1 }
 0x291   : > { %v2273_v25 = vpop.f32.mrb[31].mxu1 }
 0x292   : > { %1053 = vmax.xlane.f32.xlu1 %v1052_v59  ;;  %v1079_v28 = vmax.f32 %v2271_v27, %v2273_v25 }
 0x296   : > { %1077 = vmax.xlane.f32.xlu1 %v1076_v26  ;;  %v2277_v29 = vpop.f32.mrb[32].mxu1 }
 0x297   : > { %v2279_v30 = vpop.f32.mrb[33].mxu1 }
 0x298   : > { %v1082_v31 = vmax.f32 %v2277_v29, %v2279_v30  ;;  %v2283_v32 = vpop.f32.mrb[34].mxu1 }
 0x299   : > { %1050 = vmax.xlane.f32.xlu0 %v1049_v55  ;;  %v2285_v33 = vpop.f32.mrb[35].mxu1 }
 0x29a   : > { %1059 = vmax.xlane.f32.xlu1 %v1058_v2  ;;  %v1085_v16 = vmax.f32 %v2283_v32, %v2285_v33 }
 0x29d   : > { %1056 = vmax.xlane.f32.xlu0 %v1055_v61 }
 0x29e   : > { %1083 = vmax.xlane.f32.xlu1 %v1082_v31 }
 0x2a1   : > { %1080 = vmax.xlane.f32.xlu0 %v1079_v28 }
 0x2a5   : > { %1062 = vmax.xlane.f32.xlu0 %v1061_v5 }
 0x2a9   : > { %1086 = vmax.xlane.f32.xlu0 %v1085_v16 }
 0x2ef   : > { %v1042_v35 = vpop.xlane.xlu1 %1041 }
 0x2f0   : > { %v1088_v36 = vsub.f32 %v2188_v44, %v1042_v35  ;;  %v1089_v37 = vsub.f32 %v2190_v45, %v1042_v35  ;;  %v802_v45 = vadd.f32 %v2167_v21, %v626_v34 }
 0x2f1   : > { %v1045_v38 = vpop.xlane.xlu0 %1044 }
 0x2f2   : > { %v1120_v39 = vmul.f32 1.442695, %v1088_v36  ;;  %v1122_v40 = vmul.f32 1.442695, %v1089_v37  ;;  %v1090_v41 = vsub.f32 %v2192_v46, %v1045_v38  ;;  %v1091_v42 = vsub.f32 %v2196_v48, %v1045_v38 }
 0x2f4   : > { %1719 = vpow2.f32 %v1120_v39  ;;  %v1124_v17 = vmul.f32 1.442695, %v1090_v41  ;;  %v1126_v43 = vmul.f32 1.442695, %v1091_v42 }
 0x2f5   : > { %1721 = vpow2.f32 %v1122_v40 }
 0x2f6   : > { %1723 = vpow2.f32 %v1124_v17 }
 0x2f7   : > { %1725 = vpow2.f32 %v1126_v43  ;;  %v1048_v47 = vpop.xlane.xlu1 %1047 }
 0x2f8   : > { %v1092_v49 = vsub.f32 %v2200_v50, %v1048_v47  ;;  %v1093_v44 = vsub.f32 %v2202_v51, %v1048_v47 }
 0x2f9   : > { %v631_v55 = vpop.permute.xlu0 %630 }
 0x2fa   : > { %v1128_v59 = vmul.f32 1.442695, %v1092_v49  ;;  %v1130_v46 = vmul.f32 1.442695, %v1093_v44  ;;  %v806_v48 = vadd.f32 %v2237_v4, %v631_v55  ;;  %v808_v61 = vadd.f32 %v807_v6, %v631_v55 }
 0x2fc   : > { %1727 = vpow2.f32 %v1128_v59  ;;  %v826_v63 = vpack.c.bf16 %v806_v48, %v802_v45  ;;  %v827_v2 = vpack.c.bf16 %v808_v61, %v804_v52 }
 0x2fd   : > { %1729 = vpow2.f32 %v1130_v46 }
 0x2fe   : > { %v1720_v5 = vpop.eup %1719  ;;  %1262 = vmatprep.subr.bf16.mxu0 %v827_v2  ;;  %1639 = vmatprep.subr.bf16.mxu1 %v827_v2 }
 0x2ff   : > { %v1722_v50 = vpop.eup %1721  ;;  %1263 = vmatpush1.bf16.xpose.msra.mxu0 %v826_v63  ;;  %1647 = vmatpush1.bf16.xpose.msra.mxu1 %v826_v63 }
 0x300   : > { %v1724_v51 = vpop.eup %1723  ;;  %v1184_v21 = vadd.f32 %v1722_v50, %v1720_v5 }
 0x301   : > { %v1726_v9 = vpop.eup %1725  ;;  %v1232_v22 = vpack.c.bf16 %v1724_v51, %v1720_v5 }
 0x302   : > { %1185 = vadd.xlane.f32.xlu1 %v1184_v21  ;;  %v1233_v12 = vpack.c.bf16 %v1726_v9, %v1722_v50  ;;  %v1187_v15 = vadd.f32 %v1726_v9, %v1724_v51 }
 0x304   : > { %1280 = vmatprep.mubr.bf16.mxu0 %v1233_v12  ;;  %1188 = vadd.xlane.f32.xlu0 %v1187_v15 }
 0x306   : > { %v2298_v4 = vpop.eup %1727  ;;  %1281 = vmatmul.mubr.bf16.vlgmr.msra.gmra.mrb[36].mxu0 %v1232_v22 }
 0x307   : > { %v2300_v6 = vpop.eup %1729 }
 0x308   : > { %v1190_v20 = vadd.f32 %v2300_v6, %v2298_v4 }
 0x30a   : > { %1191 = vadd.xlane.f32.xlu1 %v1190_v20 }
 0x30f   : > { %v1066_v26 = vpop.xlane.xlu1 %1065 }
 0x310   : > { %v1104_v28 = vsub.f32 %v2241_v7, %v1066_v26  ;;  %v1105_v31 = vsub.f32 %v2243_v8, %v1066_v26 }
 0x312   : > { %v1152_v16 = vmul.f32 1.442695, %v1104_v28  ;;  %v1154_v34 = vmul.f32 1.442695, %v1105_v31 }
 0x313   : > { %v1069_v35 = vpop.xlane.xlu1 %1068 }
 0x314   : > { %1731 = vpow2.f32 %v1152_v16  ;;  %v1106_v36 = vsub.f32 %v2247_v10, %v1069_v35  ;;  %v1107_v37 = vsub.f32 %v2249_v11, %v1069_v35 }
 0x315   : > { %1733 = vpow2.f32 %v1154_v34 }
 0x316   : > { %v1156_v38 = vmul.f32 1.442695, %v1106_v36  ;;  %v1158_v39 = vmul.f32 1.442695, %v1107_v37 }
 0x317   : > { %v1072_v40 = vpop.xlane.xlu1 %1071 }
 0x318   : > { %1735 = vpow2.f32 %v1156_v38  ;;  %v1108_v41 = vsub.f32 %v2253_v13, %v1072_v40  ;;  %v1109_v42 = vsub.f32 %v2255_v14, %v1072_v40 }
 0x319   : > { %1737 = vpow2.f32 %v1158_v39 }
 0x31a   : > { %v1160_v7 = vmul.f32 1.442695, %v1108_v41  ;;  %v1162_v8 = vmul.f32 1.442695, %v1109_v42 }
 0x31b   : > { %v1075_v17 = vpop.xlane.xlu1 %1074 }
 0x31c   : > { %1739 = vpow2.f32 %v1160_v7  ;;  %v1110_v43 = vsub.f32 %v2259_v18, %v1075_v17  ;;  %v1111_v10 = vsub.f32 %v2261_v19, %v1075_v17 }
 0x31d   : > { %1741 = vpow2.f32 %v1162_v8 }
 0x31e   : > { %v1732_v11 = vpop.eup %1731  ;;  %v1164_v47 = vmul.f32 1.442695, %v1110_v43  ;;  %v1166_v49 = vmul.f32 1.442695, %v1111_v10 }
 0x31f   : > { %v1734_v44 = vpop.eup %1733  ;;  %v1054_v45 = vpop.xlane.xlu1 %1053 }
 0x320   : > { %1743 = vpow2.f32 %v1164_v47  ;;  %v1096_v13 = vsub.f32 %v2212_v56, %v1054_v45  ;;  %v1097_v14 = vsub.f32 %v2214_v57, %v1054_v45  ;;  %v2314_v52 = vadd.f32 %v1734_v44, %v1732_v11 }
 0x321   : > { %1745 = vpow2.f32 %v1166_v49 }
 0x322   : > { %v1736_v55 = vpop.eup %1735  ;;  %v1136_v59 = vmul.f32 1.442695, %v1096_v13  ;;  %v1138_v46 = vmul.f32 1.442695, %v1097_v14 }
 0x323   : > { %v1738_v18 = vpop.eup %1737  ;;  %v1078_v48 = vpop.xlane.xlu1 %1077  ;;  %v1240_v19 = vpack.c.bf16 %v1736_v55, %v1732_v11 }
 0x324   : > { %1747 = vpow2.f32 %v1136_v59  ;;  %v1112_v61 = vsub.f32 %v2265_v23, %v1078_v48  ;;  %v1113_v63 = vsub.f32 %v2267_v24, %v1078_v48  ;;  %v1241_v2 = vpack.c.bf16 %v1738_v18, %v1734_v44 }
 0x325   : > { %1749 = vpow2.f32 %v1138_v46  ;;  %v2318_v5 = vadd.f32 %v1738_v18, %v1736_v55 }
 0x326   : > { %v1740_v56 = vpop.eup %1739  ;;  %v1168_v57 = vmul.f32 1.442695, %v1112_v61  ;;  %v1170_v50 = vmul.f32 1.442695, %v1113_v63  ;;  %1312 = vmatprep.mubr.bf16.mxu1 %v1241_v2  ;;  %v1051_v51 = vpop.xlane.xlu0 %1050 }
 0x327   : > { %v1742_v21 = vpop.eup %1741  ;;  %v1094_v9 = vsub.f32 %v2206_v53, %v1051_v51  ;;  %v1095_v22 = vsub.f32 %v2208_v54, %v1051_v51  ;;  %1313 = vmatmul.mubr.bf16.vlgmr.msra.gmra.mrb[36].mxu1 %v1240_v19  ;;  %v1060_v12 = vpop.xlane.xlu1 %1059 }
 0x328   : > { %1751 = vpow2.f32 %v1168_v57  ;;  %v1100_v23 = vsub.f32 %v2224_v62, %v1060_v12  ;;  %v1101_v24 = vsub.f32 %v2229_v0, %v1060_v12  ;;  %v2324_v15 = vadd.f32 %v1742_v21, %v1740_v56 }
 0x329   : > { %1753 = vpow2.f32 %v1170_v50  ;;  %v1132_v20 = vmul.f32 1.442695, %v1094_v9  ;;  %v1134_v26 = vmul.f32 1.442695, %v1095_v22 }
 0x32a   : > { %v1744_v28 = vpop.eup %1743  ;;  %v1144_v31 = vmul.f32 1.442695, %v1100_v23  ;;  %v1146_v16 = vmul.f32 1.442695, %v1101_v24  ;;  %v1057_v34 = vpop.xlane.xlu0 %1056 }
 0x32b   : > { %v1746_v35 = vpop.eup %1745  ;;  %1755 = vpow2.f32 %v1132_v20  ;;  %v1098_v53 = vsub.f32 %v2216_v58, %v1057_v34  ;;  %v1099_v54 = vsub.f32 %v2220_v60, %v1057_v34  ;;  %v1084_v36 = vpop.xlane.xlu1 %1083  ;;  %v1242_v37 = vpack.c.bf16 %v1744_v28, %v1740_v56 }
 0x32c   : > { %1757 = vpow2.f32 %v1134_v26  ;;  %v1116_v62 = vsub.f32 %v2277_v29, %v1084_v36  ;;  %v1117_v0 = vsub.f32 %v2279_v30, %v1084_v36  ;;  %v1243_v38 = vpack.c.bf16 %v1746_v35, %v1742_v21 }
 0x32d   : > { %1759 = vpow2.f32 %v1144_v31  ;;  %v1140_v39 = vmul.f32 1.442695, %v1098_v53  ;;  %v1142_v40 = vmul.f32 1.442695, %v1099_v54  ;;  %v2330_v41 = vadd.f32 %v1746_v35, %v1744_v28 }
 0x32e   : > { %v2332_v42 = vpop.eup %1747  ;;  %1761 = vpow2.f32 %v1146_v16  ;;  %v1176_v7 = vmul.f32 1.442695, %v1116_v62  ;;  %v1178_v58 = vmul.f32 1.442695, %v1117_v0  ;;  %1320 = vmatprep.mubr.bf16.mxu1 %v1243_v38  ;;  %v1081_v60 = vpop.xlane.xlu0 %1080 }
 0x32f   : > { %v1750_v8 = vpop.eup %1749  ;;  %1763 = vpow2.f32 %v1140_v39  ;;  %1321 = vmatmul.mubr.bf16.gmra.mrb[40].mxu1 %v1242_v37  ;;  %v1114_v29 = vsub.f32 %v2271_v27, %v1081_v60  ;;  %v1115_v30 = vsub.f32 %v2273_v25, %v1081_v60  ;;  %v2350_v37 = vstv %s1345_s9  ;;  %v1395_v39 = vld [vmem:[%s2355_s15] sm:$0xff] }
 0x330   : > { %1765 = vpow2.f32 %v1142_v40  ;;  %v1196_v17 = vadd.f32 %v1750_v8, %v2332_v42 }
 0x331   : > { %1767 = vpow2.f32 %v1176_v7  ;;  %v1172_v43 = vmul.f32 1.442695, %v1114_v29  ;;  %v1174_v10 = vmul.f32 1.442695, %v1115_v30 }
 0x332   : > { %v1752_v11 = vpop.eup %1751  ;;  %1769 = vpow2.f32 %v1178_v58  ;;  %1197 = vadd.xlane.f32.xlu1 %v1196_v17  ;;  %v1063_v47 = vpop.xlane.xlu0 %1062 }
 0x333   : > { %v1754_v49 = vpop.eup %1753  ;;  %1771 = vpow2.f32 %v1172_v43  ;;  %v1102_v44 = vsub.f32 %v2231_v1, %v1063_v47  ;;  %v1103_v45 = vsub.f32 %v2235_v3, %v1063_v47 }
 0x334   : > { %1773 = vpow2.f32 %v1174_v10  ;;  %v1220_v27 = vadd.f32 %v1754_v49, %v1752_v11 }
 0x335   : > { %v1756_v13 = vpop.eup %1755  ;;  %v1148_v25 = vmul.f32 1.442695, %v1102_v44  ;;  %v1150_v14 = vmul.f32 1.442695, %v1103_v45 }
 0x336   : > { %v1758_v55 = vpop.eup %1757  ;;  %v1087_v59 = vpop.xlane.xlu0 %1086  ;;  %v1234_v46 = vpack.c.bf16 %v1756_v13, %v2298_v4 }
 0x337   : > { %v1760_v18 = vpop.eup %1759  ;;  %1775 = vpow2.f32 %v1148_v25  ;;  %v1118_v48 = vsub.f32 %v2283_v32, %v1087_v59  ;;  %v1119_v19 = vsub.f32 %v2285_v33, %v1087_v59  ;;  %v1235_v61 = vpack.c.bf16 %v1758_v55, %v2300_v6 }
 0x338   : > { %v1762_v1 = vpop.eup %1761  ;;  %1777 = vpow2.f32 %v1150_v14  ;;  %v1193_v3 = vadd.f32 %v1758_v55, %v1756_v13 }
 0x339   : > { %v1764_v63 = vpop.eup %1763  ;;  %v1180_v2 = vmul.f32 1.442695, %v1118_v48  ;;  %v1182_v56 = vmul.f32 1.442695, %v1119_v19  ;;  %1288 = vmatprep.mubr.bf16.mxu0 %v1235_v61  ;;  %v1202_v57 = vadd.f32 %v1762_v1, %v1760_v18 }
 0x33a   : > { %v1766_v50 = vpop.eup %1765  ;;  %1194 = vadd.xlane.f32.xlu0 %v1193_v3  ;;  %1289 = vmatmul.mubr.bf16.gmra.mrb[40].mxu0 %v1234_v46  ;;  %v1236_v4 = vpack.c.bf16 %v1764_v63, %v2332_v42  ;;  %v1403_v46 = vld [vmem:[%s2355_s15 + $0x40] sm:$0xff] }
 0x33b   : > { %v1768_v51 = vpop.eup %1767  ;;  %1779 = vpow2.f32 %v1180_v2  ;;  %1203 = vadd.xlane.f32.xlu1 %v1202_v57  ;;  %v1237_v32 = vpack.c.bf16 %v1766_v50, %v1750_v8  ;;  %v1199_v33 = vadd.f32 %v1766_v50, %v1764_v63  ;;  %v1396_v8 = vld [vmem:[%s2355_s15 + $0x8] sm:$0xff] }
 0x33c   : > { %v1770_v21 = vpop.eup %1769  ;;  %1781 = vpow2.f32 %v1182_v56 }
 0x33d   : > { %v1772_v6 = vpop.eup %1771  ;;  %1296 = vmatprep.mubr.bf16.mxu0 %v1237_v32  ;;  %v1226_v9 = vadd.f32 %v1770_v21, %v1768_v51  ;;  %v1405_v32 = vld [vmem:[%s2355_s15 + $0x50] sm:$0xff] }
 0x33e   : > { %v1774_v22 = vpop.eup %1773  ;;  %1200 = vadd.xlane.f32.xlu0 %v1199_v33  ;;  %v1244_v12 = vpack.c.bf16 %v1772_v6, %v1752_v11 }
 0x33f   : > { %1209 = vadd.xlane.f32.xlu1 %v2314_v52  ;;  %v1245_v23 = vpack.c.bf16 %v1774_v22, %v1754_v49  ;;  %v1223_v24 = vadd.f32 %v1774_v22, %v1772_v6 }
 0x341   : > { %v1776_v20 = vpop.eup %1775  ;;  %1328 = vmatprep.mubr.bf16.mxu1 %v1245_v23 }
 0x342   : > { %v1778_v26 = vpop.eup %1777  ;;  %1297 = vmatmul.mubr.bf16.gmra.mrb[44].mxu0 %v1236_v4  ;;  %1329 = vmatmul.mubr.bf16.gmra.mrb[44].mxu1 %v1244_v12  ;;  %v1238_v28 = vpack.c.bf16 %v1776_v20, %v1760_v18  ;;  %v1406_v12 = vld [vmem:[%s2355_s15 + $0x58] sm:$0xff] }
 0x343   : > { %1215 = vadd.xlane.f32.xlu1 %v2324_v15  ;;  %v1239_v31 = vpack.c.bf16 %v1778_v26, %v1762_v1  ;;  %v1205_v16 = vadd.f32 %v1778_v26, %v1776_v20  ;;  %v1404_v1 = vld [vmem:[%s2355_s15 + $0x48] sm:$0xff] }
 0x345   : > { %v1780_v34 = vpop.eup %1779  ;;  %1304 = vmatprep.mubr.bf16.mxu0 %v1239_v31  ;;  %1206 = vadd.xlane.f32.xlu0 %v1205_v16 }
 0x346   : > { %v1782_v35 = vpop.eup %1781  ;;  %v1246_v53 = vpack.c.bf16 %v1780_v34, %v1768_v51 }
 0x347   : > { %1221 = vadd.xlane.f32.xlu1 %v1220_v27  ;;  %v1247_v52 = vpack.c.bf16 %v1782_v35, %v1770_v21  ;;  %v1229_v54 = vadd.f32 %v1782_v35, %v1780_v34 }
 0x349   : > { %1212 = vadd.xlane.f32.xlu0 %v2318_v5  ;;  %1336 = vmatprep.mubr.bf16.mxu1 %v1247_v52  ;;  %v1397_v52 = vld [vmem:[%s2355_s15 + $0x10] sm:$0xff] }
 0x34a   : > { %1305 = vmatmul.mubr.bf16.gmra.mrb[48].mxu0 %v1238_v28  ;;  %1337 = vmatmul.mubr.bf16.gmra.mrb[48].mxu1 %v1246_v53 }
 0x34b   : > { %1227 = vadd.xlane.f32.xlu1 %v1226_v9 }
 0x34d   : > { %1218 = vadd.xlane.f32.xlu0 %v2330_v41 }
 0x351   : > { %1224 = vadd.xlane.f32.xlu0 %v1223_v24 }
 0x355   : > { %1230 = vadd.xlane.f32.xlu0 %v1229_v54 }
 0x38f   : > { %v1186_v15 = vpop.xlane.xlu1 %1185 }
 0x390   : > { %1783 = vrcp.f32 %v1186_v15 }
 0x391   : > { %v1189_v36 = vpop.xlane.xlu0 %1188 }
 0x392   : > { %1785 = vrcp.f32 %v1189_v36 }
 0x397   : > { %v1192_v40 = vpop.xlane.xlu1 %1191 }
 0x39a   : > { %v1784_v5 = vpop.eup %1783 }
 0x39b   : > { %v1363_v0 = vmul.f32 %v1784_v5, %v2350_v37 }
 0x39c   : > { %v1786_v62 = vpop.eup %1785 }
 0x39d   : > { %v1364_v7 = vmul.f32 %v1786_v62, %v2350_v37 }
 0x3bf   : > { %v1198_v10 = vpop.xlane.xlu1 %1197 }
 0x3c7   : > { %v1195_v58 = vpop.xlane.xlu0 %1194 }
 0x3c8   : > { %v1204_v47 = vpop.xlane.xlu1 %1203 }
 0x3cb   : > { %v1201_v11 = vpop.xlane.xlu0 %1200 }
 0x3cc   : > { %v1210_v44 = vpop.xlane.xlu1 %1209 }
 0x3cd   : > { %1787 = vrcp.f32 %v1210_v44 }
 0x3d0   : > { %v1216_v27 = vpop.xlane.xlu1 %1215 }
 0x3d2   : > { %v2368_v49 = vpop.xlane.xlu0 %1206 }
 0x3d4   : > { %v1222_v9 = vpop.xlane.xlu1 %1221 }
 0x3d6   : > { %v1213_v45 = vpop.xlane.xlu0 %1212 }
 0x3d7   : > { %1789 = vrcp.f32 %v1213_v45  ;;  %v1788_v25 = vpop.eup %1787 }
 0x3d8   : > { %1791 = vrcp.f32 %v1216_v27  ;;  %v1371_v55 = vmul.f32 %v1788_v25, %v2350_v37  ;;  %v1228_v34 = vpop.xlane.xlu1 %1227  ;;  %v1400_v25 = vld [vmem:[%s2355_s15 + $0x28] sm:$0xff] }
 0x3d9   : > { %v1282_v38 = vpop.f32.mrb[36].mxu0 }
 0x3da   : > { %v1379_v41 = vmul.f32 %v1363_v0, %v1282_v38  ;;  %v1284_v42 = vpop.f32.mrb[37].mxu0  ;;  %v1219_v13 = vpop.xlane.xlu0 %1218  ;;  %v1398_v0 = vld [vmem:[%s2355_s15 + $0x18] sm:$0xff] }
 0x3db   : > { %v1285_v60 = vpop.f32.mrb[38].mxu0  ;;  %1793 = vrcp.f32 %v1219_v13 }
 0x3dc   : > { %v1411_v29 = vadd.f32 %v1395_v39, %v1379_v41  ;;  %v1380_v30 = vmul.f32 %v1364_v7, %v1285_v60  ;;  %v1287_v17 = vpop.f32.mrb[39].mxu0  ;;  %1795 = vrcp.f32 %v1192_v40 }
 0x3dd   : > { %1797 = vrcp.f32 %v1195_v58  ;;  %v1399_v17 = vld [vmem:[%s2355_s15 + $0x20] sm:$0xff] }
 0x3de   : > { %1427 = vst [vmem:[%s2363_s16] sm:$0xff] %v1411_v29  ;;  %v1412_v43 = vadd.f32 %v1396_v8, %v1380_v30  ;;  %1799 = vrcp.f32 %v1198_v10  ;;  %v1225_v26 = vpop.xlane.xlu0 %1224  ;;  %v1407_v10 = vld [vmem:[%s2355_s15 + $0x60] sm:$0xff] }
 0x3df   : > { %1801 = vrcp.f32 %v1222_v9 }
 0x3e0   : > { %1428 = vst [vmem:[%s2363_s16 + $0x8] sm:$0xff] %v1412_v43  ;;  %1803 = vrcp.f32 %v1201_v11 }
 0x3e1   : > { %v1790_v14 = vpop.eup %1789  ;;  %1805 = vrcp.f32 %v1225_v26  ;;  %v1402_v26 = vld [vmem:[%s2355_s15 + $0x38] sm:$0xff] }
 0x3e2   : > { %v1372_v19 = vmul.f32 %v1790_v14, %v2350_v37  ;;  %v1792_v56 = vpop.eup %1791  ;;  %1807 = vrcp.f32 %v1204_v47  ;;  %v1231_v54 = vpop.xlane.xlu0 %1230 }
 0x3e3   : > { %v1373_v4 = vmul.f32 %v1792_v56, %v2350_v37  ;;  %1809 = vrcp.f32 %v1228_v34 }
 0x3e4   : > { %1811 = vrcp.f32 %v2368_v49 }
 0x3e5   : > { %v1794_v50 = vpop.eup %1793  ;;  %1813 = vrcp.f32 %v1231_v54 }
 0x3e6   : > { %v1374_v6 = vmul.f32 %v1794_v50, %v2350_v37  ;;  %v1796_v31 = vpop.eup %1795 }
 0x3e7   : > { %v1798_v16 = vpop.eup %1797  ;;  %v1365_v35 = vmul.f32 %v1796_v31, %v2350_v37  ;;  %v1410_v31 = vld [vmem:[%s2355_s15 + $0x78] sm:$0xff] }
 0x3e8   : > { %v1366_v5 = vmul.f32 %v1798_v16, %v2350_v37  ;;  %v1800_v38 = vpop.eup %1799 }
 0x3e9   : > { %v1802_v42 = vpop.eup %1801  ;;  %v1367_v8 = vmul.f32 %v1800_v38, %v2350_v37 }
 0x3ea   : > { %v1804_v7 = vpop.eup %1803  ;;  %v1375_v29 = vmul.f32 %v1802_v42, %v2350_v37 }
 0x3eb   : > { %v1806_v60 = vpop.eup %1805  ;;  %v1368_v45 = vmul.f32 %v1804_v7, %v2350_v37 }
 0x3ec   : > { %v1376_v27 = vmul.f32 %v1806_v60, %v2350_v37 }
 0x3fa   : > { %v1314_v59 = vpop.f32.mrb[36].mxu1 }
 0x3fb   : > { %v1387_v18 = vmul.f32 %v1371_v55, %v1314_v59  ;;  %v1316_v48 = vpop.f32.mrb[37].mxu1  ;;  %v1408_v55 = vld [vmem:[%s2355_s15 + $0x68] sm:$0xff]  ;;  %v1808_v59 = vpop.eup %1807 }
 0x3fc   : > { %v1317_v61 = vpop.f32.mrb[38].mxu1  ;;  %v1369_v50 = vmul.f32 %v1808_v59, %v2350_v37 }
 0x3fd   : > { %v1419_v3 = vadd.f32 %v1403_v46, %v1387_v18  ;;  %v1388_v63 = vmul.f32 %v1372_v19, %v1317_v61  ;;  %v1319_v2 = vpop.f32.mrb[39].mxu1 }
 0x3ff   : > { %1435 = vst [vmem:[%s2363_s16 + $0x40] sm:$0xff] %v1419_v3  ;;  %v1420_v57 = vadd.f32 %v1404_v1, %v1388_v63  ;;  %v1810_v3 = vpop.eup %1809 }
 0x400   : > { %v1812_v63 = vpop.eup %1811 }
 0x401   : > { %1436 = vst [vmem:[%s2363_s16 + $0x48] sm:$0xff] %v1420_v57  ;;  %v1814_v57 = vpop.eup %1813 }
 0x402   : > { %v1322_v51 = vpop.f32.mrb[40].mxu1 }
 0x403   : > { %v1389_v33 = vmul.f32 %v1373_v4, %v1322_v51  ;;  %v1324_v21 = vpop.f32.mrb[41].mxu1  ;;  %v1377_v4 = vmul.f32 %v1810_v3, %v2350_v37 }
 0x404   : > { %v1325_v22 = vpop.f32.mrb[42].mxu1  ;;  %v1409_v21 = vld [vmem:[%s2355_s15 + $0x70] sm:$0xff] }
 0x405   : > { %v1421_v23 = vadd.f32 %v1405_v32, %v1389_v33  ;;  %v1390_v24 = vmul.f32 %v1374_v6, %v1325_v22  ;;  %v1327_v20 = vpop.f32.mrb[43].mxu1  ;;  %v1401_v32 = vld [vmem:[%s2355_s15 + $0x30] sm:$0xff] }
 0x407   : > { %1437 = vst [vmem:[%s2363_s16 + $0x50] sm:$0xff] %v1421_v23  ;;  %v1422_v28 = vadd.f32 %v1406_v12, %v1390_v24  ;;  %v1370_v23 = vmul.f32 %v1812_v63, %v2350_v37  ;;  %v1378_v24 = vmul.f32 %v1814_v57, %v2350_v37 }
 0x409   : > { %1438 = vst [vmem:[%s2363_s16 + $0x58] sm:$0xff] %v1422_v28 }
 0x40d   : > { %v1290_v53 = vpop.f32.mrb[40].mxu0 }
 0x40e   : > { %v1381_v15 = vmul.f32 %v1365_v35, %v1290_v53  ;;  %v1292_v36 = vpop.f32.mrb[41].mxu0 }
 0x40f   : > { %v1293_v62 = vpop.f32.mrb[42].mxu0 }
 0x410   : > { %v1413_v39 = vadd.f32 %v1397_v52, %v1381_v15  ;;  %v1382_v40 = vmul.f32 %v1366_v5, %v1293_v62  ;;  %v1295_v41 = vpop.f32.mrb[43].mxu0 }
 0x412   : > { %1429 = vst [vmem:[%s2363_s16 + $0x10] sm:$0xff] %v1413_v39  ;;  %v1414_v58 = vadd.f32 %v1398_v0, %v1382_v40 }
 0x414   : > { %1430 = vst [vmem:[%s2363_s16 + $0x18] sm:$0xff] %v1414_v58 }
 0x415   : > { %v1298_v30 = vpop.f32.mrb[44].mxu0  ;;  %v1330_v43 = vpop.f32.mrb[44].mxu1 }
 0x416   : > { %v1383_v11 = vmul.f32 %v1367_v8, %v1298_v30  ;;  %v1391_v47 = vmul.f32 %v1375_v29, %v1330_v43  ;;  %v1300_v49 = vpop.f32.mrb[45].mxu0  ;;  %v1332_v44 = vpop.f32.mrb[45].mxu1 }
 0x417   : > { %v1301_v13 = vpop.f32.mrb[46].mxu0  ;;  %v1333_v14 = vpop.f32.mrb[46].mxu1 }
 0x418   : > { %v1415_v46 = vadd.f32 %v1399_v17, %v1383_v11  ;;  %v1423_v18 = vadd.f32 %v1407_v10, %v1391_v47  ;;  %v1384_v48 = vmul.f32 %v1368_v45, %v1301_v13  ;;  %v1392_v19 = vmul.f32 %v1376_v27, %v1333_v14  ;;  %v1303_v61 = vpop.f32.mrb[47].mxu0  ;;  %v1335_v1 = vpop.f32.mrb[47].mxu1 }
 0x41a   : > { %1431 = vst [vmem:[%s2363_s16 + $0x20] sm:$0xff] %v1415_v46  ;;  %1439 = vst [vmem:[%s2363_s16 + $0x60] sm:$0xff] %v1423_v18  ;;  %v1416_v2 = vadd.f32 %v1400_v25, %v1384_v48  ;;  %v1424_v56 = vadd.f32 %v1408_v55, %v1392_v19 }
 0x41c   : > { %1432 = vst [vmem:[%s2363_s16 + $0x28] sm:$0xff] %v1416_v2  ;;  %1440 = vst [vmem:[%s2363_s16 + $0x68] sm:$0xff] %v1424_v56 }
 0x41d   : > { %v1306_v51 = vpop.f32.mrb[48].mxu0  ;;  %v1338_v33 = vpop.f32.mrb[48].mxu1 }
 0x41e   : > { %v1385_v6 = vmul.f32 %v1369_v50, %v1306_v51  ;;  %v1393_v9 = vmul.f32 %v1377_v4, %v1338_v33  ;;  %v1308_v22 = vpop.f32.mrb[49].mxu0  ;;  %v1340_v12 = vpop.f32.mrb[49].mxu1 }
 0x41f   : > { %v1309_v20 = vpop.f32.mrb[50].mxu0  ;;  %v1341_v28 = vpop.f32.mrb[50].mxu1 }
 0x420   : > { %v1417_v16 = vadd.f32 %v1401_v32, %v1385_v6  ;;  %v1425_v34 = vadd.f32 %v1409_v21, %v1393_v9  ;;  %v1386_v35 = vmul.f32 %v1370_v23, %v1309_v20  ;;  %v1394_v53 = vmul.f32 %v1378_v24, %v1341_v28  ;;  %v1311_v52 = vpop.f32.mrb[51].mxu0  ;;  %v1343_v54 = vpop.f32.mrb[51].mxu1 }
 0x422   : > { %1433 = vst [vmem:[%s2363_s16 + $0x30] sm:$0xff] %v1417_v16  ;;  %1441 = vst [vmem:[%s2363_s16 + $0x70] sm:$0xff] %v1425_v34  ;;  %v1418_v15 = vadd.f32 %v1402_v26, %v1386_v35  ;;  %v1426_v36 = vadd.f32 %v1410_v31, %v1394_v53 }
 0x424   : > { %1434 = vst [vmem:[%s2363_s16 + $0x38] sm:$0xff] %v1418_v15  ;;  %1442 = vst [vmem:[%s2363_s16 + $0x78] sm:$0xff] %v1426_v36 }
 0x425 PF: > { %s17_s29 = sadd.s32 1, %s1869_s29   ;;  %s2441_s23 = smov %s1849_s24 }
 0x426   : > { %p14_p12 = scmp.ge.s32.totalorder %s17_s29, 6   ;;  %s2442_s24 = smov %s1963_s11 }
 0x427   : > { %s2443_s25 = smov %s1861_s27  ;;  %s2444_s26 = smov %s1865_s28 }
 0x428   : > { %s2445_s27 = smov %s2448_s5  ;;  %s2446_s28 = smov %s2452_s30 }
 0x429   :  { %16 = sbr.rel (!%p14_p12) target bundleno = 6 (0x6), region = 123 }

</bundles_post_ra>
